<compile_context>
chip_gen: v7x
topology: tpu7x:2x2x1
jax: 0.10.0
libtpu: 0.0.40
codegen_flags: <defaults>
</compile_context>

<pallas_src>
import functools

import jax
import jax.numpy as jnp
from jax import lax
from jax.experimental import pallas as pl
from jax.experimental.pallas import tpu as pltpu


# (kernel_size, stride, out_channels) for conv1..conv8; padding = kernel_size // 2.
_LAYER_CFG = (
    (3, 1, 96),
    (3, 1, 96),
    (3, 2, 96),
    (3, 1, 192),
    (3, 1, 192),
    (3, 2, 192),
    (3, 1, 192),
    (1, 1, 192),
)

_EPS = 1e-5
_NEG_SLOPE = 0.01
_LANE = 128


def _round_up(x, m):
    return (x + m - 1) // m * m


# ----------------------------------------------------------------------------
# Kernels
# ----------------------------------------------------------------------------
def _conv_taps_kernel(x_ref, w_ref, b_ref, o_ref, acc_ref, *, taps):
    """Fused Conv2d + folded BatchNorm + LeakyReLU for one image.

    The conv is a sum over k*k taps of [Ro, Cin] @ [Cin, Cout] MXU GEMMs; each
    tap reads a static row-offset window of the flattened padded activation
    (phase-decomposed for strided layers), so no im2col patches ever hit HBM.
    """
    Ro = acc_ref.shape[0]
    for idx, (p, off, t) in enumerate(taps):           # static Python unroll
        xt = x_ref[0, p, off:off + Ro, :]               # [Ro, Cin] bf16
        part = jnp.dot(xt, w_ref[t], preferred_element_type=jnp.float32)
        if idx == 0:
            acc_ref[...] = part
        else:
            acc_ref[...] += part
    out = acc_ref[...] + b_ref[...]                      # folded BN bias
    out = jnp.where(out >= 0.0, out, _NEG_SLOPE * out)   # LeakyReLU(0.01)
    o_ref[0] = out.astype(o_ref.dtype)


def _head_kernel(x_ref, w8_ref, b8_ref, wc_ref, bc_ref, o_ref):
    """Fused conv8 (1x1) + BN + LeakyReLU + class_conv + global average pool."""
    y = jnp.dot(x_ref[0], w8_ref[...], preferred_element_type=jnp.float32)
    y = y + b8_ref[...]
    y = jnp.where(y >= 0.0, y, _NEG_SLOPE * y)
    # Match the bf16 inter-layer quantization of the conv stack, pool in f32.
    ym = jnp.mean(y.astype(jnp.bfloat16).astype(jnp.float32), axis=0,
                  keepdims=True)                                   # [1, C]
    # pool(class_conv(x)) == class_conv(pool(x)) (both linear).
    logits = jnp.dot(ym.astype(jnp.bfloat16), wc_ref[...],
                     preferred_element_type=jnp.float32)
    o_ref[...] = logits + bc_ref[...]


# ----------------------------------------------------------------------------
# Pallas wrappers
# ----------------------------------------------------------------------------
def _conv_block(x_nhwc, layer):
    """[B, H, W, Cin_pad] bf16 -> [B, Ho, Wo, Cout_pad] bf16."""
    B, H, W, Ci = x_nhwc.shape
    k, s = layer["ksize"], layer["stride"]
    T, _, Co = layer["w"].shape
    pad = k // 2
    Ho = (H + 2 * pad - k) // s + 1
    Wo = (W + 2 * pad - k) // s + 1

    # Spatial zero-pad (layout only); round padded dims up to the stride.
    xp = x_nhwc
    if pad:
        xp = jnp.pad(xp, ((0, 0), (pad, pad), (pad, pad), (0, 0)))
    Hp, Wp = H + 2 * pad, W + 2 * pad
    Hp_r, Wp_r = _round_up(Hp, s), _round_up(Wp, s)
    if (Hp_r, Wp_r) != (Hp, Wp):
        xp = jnp.pad(xp, ((0, 0), (0, Hp_r - Hp), (0, Wp_r - Wp), (0, 0)))
    Hph, Wph = Hp_r // s, Wp_r // s

    # Phase-decompose for the stride and flatten each phase to rows so every
    # conv tap becomes a static row offset inside the kernel.
    P = s * s
    phases = [xp[:, py::s, px::s, :].reshape(B, 1, Hph * Wph, Ci)
              for py in range(s) for px in range(s)]
    xf = phases[0] if P == 1 else jnp.concatenate(phases, axis=1)

    Ro = Ho * Wph                         # dense output rows (valid cols < Wo)
    max_off = ((k - 1) // s) * (Wph + 1)  # largest tap row offset
    Rp = _round_up(max(Hph * Wph, Ro + max_off), 8)
    if Rp > Hph * Wph:
        xf = jnp.pad(xf, ((0, 0), (0, 0), (0, Rp - Hph * Wph), (0, 0)))

    taps = tuple(((dy % s) * s + (dx % s),          # phase index
                  (dy // s) * Wph + (dx // s),      # static row offset
                  dy * k + dx)                      # weight tap index
                 for dy in range(k) for dx in range(k))

    out = pl.pallas_call(
        functools.partial(_conv_taps_kernel, taps=taps),
        out_shape=jax.ShapeDtypeStruct((B, Ro, Co), jnp.bfloat16),
        grid=(B,),
        in_specs=[
            pl.BlockSpec((1, P, Rp, Ci), lambda b: (b, 0, 0, 0)),  # one image
            pl.BlockSpec((T, Ci, Co), lambda b: (0, 0, 0)),        # resident W
            pl.BlockSpec((1, Co), lambda b: (0, 0)),               # folded bias
        ],
        out_specs=pl.BlockSpec((1, Ro, Co), lambda b: (b, 0, 0)),  # lane-dense
        scratch_shapes=[pltpu.VMEM((Ro, Co), jnp.float32)],
        compiler_params=pltpu.CompilerParams(
            dimension_semantics=("parallel",)),
    )(xf, layer["w"], layer["b"])

    out = out.reshape(B, Ho, Wph, Co)
    return out[:, :, :Wo, :] if Wph != Wo else out


def _head_block(x_nhwc, layer8, head):
    """Fused conv8 (1x1) + class_conv + global average pool."""
    B, H, W, C = x_nhwc.shape
    S = H * W
    C8 = layer8["w"].shape[-1]
    ncls = head["w"].shape[-1]
    x3 = x_nhwc.reshape(B, S, C)
    w8 = layer8["w"][0]                              # 1x1 conv -> [C, C8]
    return pl.pallas_call(
        _head_kernel,
        out_shape=jax.ShapeDtypeStruct((B, ncls), jnp.float32),
        grid=(B,),
        in_specs=[
            pl.BlockSpec((1, S, C), lambda b: (b, 0, 0)),
            pl.BlockSpec((C, C8), lambda b: (0, 0)),
            pl.BlockSpec((1, C8), lambda b: (0, 0)),
            pl.BlockSpec((C8, ncls), lambda b: (0, 0)),
            pl.BlockSpec((1, ncls), lambda b: (0, 0)),
        ],
        out_specs=pl.BlockSpec((1, ncls), lambda b: (b, 0)),
        compiler_params=pltpu.CompilerParams(
            dimension_semantics=("parallel",)),
    )(x3, w8, layer8["b"], head["w"], head["b"])


def allconvnet_forward(x_nchw, layers, head):
    """x_nchw: [B, C, H, W] float32 -> [B, n_classes] float32 logits."""
    x = jnp.transpose(x_nchw, (0, 2, 3, 1)).astype(jnp.bfloat16)   # NHWC bf16
    cin0 = layers[0]["w"].shape[1]
    if x.shape[-1] < cin0:                                         # channel pad
        x = jnp.pad(x, ((0, 0), (0, 0), (0, 0), (0, cin0 - x.shape[-1])))
    for layer in layers[:-1]:
        # Dropout layers are identity in eval mode.
        x = _conv_block(x, layer)
    # conv8 (1x1) + class_conv + adaptive_avg_pool2d(1) fused into one call.
    return _head_block(x, layers[-1], head)


# ----------------------------------------------------------------------------
# Parameters (BatchNorm folded, channels zero-padded) and pure-JAX reference
# ----------------------------------------------------------------------------
def init_params(key, in_channels, n_classes=10):
    layers = []
    cin_real = in_channels
    cin_pad = _round_up(in_channels, 8)
    keys = iter(jax.random.split(key, 6 * len(_LAYER_CFG) + 2))
    for (k, s, cout) in _LAYER_CFG:
        cout_pad = _round_up(cout, _LANE)
        fan_in = k * k * cin_real
        w = jax.random.normal(next(keys), (k, k, cin_real, cout), jnp.float32) \
            * jnp.sqrt(2.0 / fan_in)                                  # HWIO
        b = 0.01 * jax.random.normal(next(keys), (cout,), jnp.float32)
        gamma = 1.0 + 0.1 * jax.random.normal(next(keys), (cout,), jnp.float32)
        beta = 0.1 * jax.random.normal(next(keys), (cout,), jnp.float32)
        rmean = 0.05 * jax.random.normal(next(keys), (cout,), jnp.float32)
        rvar = jnp.abs(
            1.0 + 0.1 * jax.random.normal(next(keys), (cout,), jnp.float32))
        # Fold eval-mode BatchNorm2d into the conv weight and bias.
        scale = gamma / jnp.sqrt(rvar + _EPS)
        w_fold = w * scale
        b_fold = b * scale + beta - rmean * scale
        # Zero-pad channels to lane-aligned sizes and stack the k*k taps.
        w_pad = jnp.zeros((k * k, cin_pad, cout_pad), jnp.float32)
        w_pad = w_pad.at[:, :cin_real, :cout].set(
            w_fold.reshape(k * k, cin_real, cout))
        b_pad = jnp.zeros((1, cout_pad), jnp.float32).at[0, :cout].set(b_fold)
        layers.append(dict(
            ksize=k, stride=s,
            w=w_pad.astype(jnp.bfloat16),           # [k*k, Cin_pad, Cout_pad]
            b=b_pad,                                 # [1, Cout_pad] f32
            w_hwio=w_fold.astype(jnp.bfloat16),      # unpadded, for reference
            b_ref=b_fold,                            # [Cout] f32
        ))
        cin_real, cin_pad = cout, cout_pad
    w_cls = jax.random.normal(next(keys), (cin_real, n_classes), jnp.float32) \
        * jnp.sqrt(1.0 / cin_real)
    b_cls = 0.01 * jax.random.normal(next(keys), (n_classes,), jnp.float32)
    wc_pad = jnp.zeros((cin_pad, n_classes), jnp.float32) \
        .at[:cin_real, :].set(w_cls)
    head = dict(
        w=wc_pad.astype(jnp.bfloat16), b=b_cls.reshape(1, n_classes),
        w_ref=w_cls.astype(jnp.bfloat16), b_ref=b_cls.reshape(1, n_classes))
    return layers, head


def reference_forward(x_nchw, layers, head):
    """Pure-JAX (lax.conv) reference using the same folded weights / dtypes."""
    x = jnp.transpose(x_nchw, (0, 2, 3, 1)).astype(jnp.bfloat16)
    for layer in layers:
        k, s = layer["ksize"], layer["stride"]
        pad = k // 2
        y = lax.conv_general_dilated(
            x, layer["w_hwio"],
            window_strides=(s, s),
            padding=((pad, pad), (pad, pad)),
            dimension_numbers=("NHWC", "HWIO", "NHWC"),
            preferred_element_type=jnp.float32)
        y = y + layer["b_ref"]
        y = jnp.where(y >= 0.0, y, _NEG_SLOPE * y)
        x = y.astype(jnp.bfloat16)
    xm = jnp.mean(x.astype(jnp.float32), axis=(1, 2))              # [B, C]
    return jnp.dot(xm.astype(jnp.bfloat16), head["w_ref"],
                   preferred_element_type=jnp.float32) + head["b_ref"]


if __name__ == "__main__":
    key = jax.random.PRNGKey(0)
    kx, kp = jax.random.split(key)

    B, C, H, W = 2, 4, 16, 16
    n_classes = 10

    x = jax.random.normal(kx, (B, C, H, W), jnp.float32)
    layers, head = init_params(kp, C, n_classes)

    out = allconvnet_forward(x, layers, head)
    jax.block_until_ready(out)

    ref = reference_forward(x, layers, head)
    assert out.shape == (B, n_classes)
    assert jnp.allclose(out, ref, atol=1e-2, rtol=1e-2), "mismatch vs reference"

    print("KERNEL_OK")
</pallas_src>

<mosaic_0001>
module attributes {stable_mosaic.version = 11 : i64} {
  func.func @_conv_taps_kernel(%arg0: i32, %arg1: memref<1x1x328x8xbf16, #tpu.memory_space<vmem>>, %arg2: memref<9x8x128xbf16, #tpu.memory_space<vmem>>, %arg3: memref<1x128xf32, #tpu.memory_space<vmem>>, %arg4: memref<1x288x128xbf16, #tpu.memory_space<vmem>>, %arg5: memref<288x128xf32, #tpu.memory_space<vmem>>) attributes {dimension_semantics = [#tpu.dimension_semantics<parallel>], iteration_bounds = array<i64: 2>, scalar_prefetch = 0 : i64, scratch_operands = 1 : i64, tpu.core_type = #tpu.core_type<tc>, window_params = [{transform_indices = @transform_0, window_bounds = array<i64: 1, 1, 328, 8>}, {pipeline_mode = #tpu.pipeline_mode<synchronous>, transform_indices = @transform_1, window_bounds = array<i64: 9, 8, 128>}, {pipeline_mode = #tpu.pipeline_mode<synchronous>, transform_indices = @transform_2, window_bounds = array<i64: 1, 128>}, {transform_indices = @transform_3, window_bounds = array<i64: 1, 288, 128>}]} {
    %c0 = arith.constant 0 : index
    %c0_0 = arith.constant 0 : index
    %c0_1 = arith.constant 0 : index
    %c0_2 = arith.constant 0 : index
    %0 = vector.load %arg1[%c0, %c0_0, %c0_1, %c0_2] : memref<1x1x328x8xbf16, #tpu.memory_space<vmem>>, vector<1x1x288x8xbf16>
    %1 = vector.shape_cast %0 : vector<1x1x288x8xbf16> to vector<288x8xbf16>
    %c0_3 = arith.constant 0 : index
    %c0_4 = arith.constant 0 : index
    %c0_5 = arith.constant 0 : index
    %2 = vector.load %arg2[%c0_3, %c0_4, %c0_5] : memref<9x8x128xbf16, #tpu.memory_space<vmem>>, vector<1x8x128xbf16>
    %3 = vector.shape_cast %2 : vector<1x8x128xbf16> to vector<8x128xbf16>
    %cst = arith.constant dense<0.000000e+00> : vector<288x128xf32>
    %4 = tpu.matmul %1, %3, %cst {dimension_numbers = #tpu.dot_dimension_numbers<[1], [0], [0], [1], [0, 0, 1, 1], [], []>} : vector<288x8xbf16>, vector<8x128xbf16>, vector<288x128xf32> -> vector<288x128xf32>
    %c0_6 = arith.constant 0 : index
    %c0_7 = arith.constant 0 : index
    %5 = vector.load %arg5[%c0_6, %c0_7] : memref<288x128xf32, #tpu.memory_space<vmem>>, vector<288x128xf32>
    tpu.vector_store %arg5[%c0_6, %c0_7], %4 {strides = array<i32>} : memref<288x128xf32, #tpu.memory_space<vmem>>, vector<288x128xf32>,
    %c0_8 = arith.constant 0 : index
    %c0_9 = arith.constant 0 : index
    %c1 = arith.constant 1 : index
    %c0_10 = arith.constant 0 : index
    %6 = vector.load %arg1[%c0_8, %c0_9, %c1, %c0_10] : memref<1x1x328x8xbf16, #tpu.memory_space<vmem>>, vector<1x1x288x8xbf16>
    %7 = vector.shape_cast %6 : vector<1x1x288x8xbf16> to vector<288x8xbf16>
    %c1_11 = arith.constant 1 : index
    %c0_12 = arith.constant 0 : index
    %c0_13 = arith.constant 0 : index
    %8 = vector.load %arg2[%c1_11, %c0_12, %c0_13] : memref<9x8x128xbf16, #tpu.memory_space<vmem>>, vector<1x8x128xbf16>
    %9 = vector.shape_cast %8 : vector<1x8x128xbf16> to vector<8x128xbf16>
    %cst_14 = arith.constant dense<0.000000e+00> : vector<288x128xf32>
    %10 = tpu.matmul %7, %9, %cst_14 {dimension_numbers = #tpu.dot_dimension_numbers<[1], [0], [0], [1], [0, 0, 1, 1], [], []>} : vector<288x8xbf16>, vector<8x128xbf16>, vector<288x128xf32> -> vector<288x128xf32>
    %c0_15 = arith.constant 0 : index
    %c0_16 = arith.constant 0 : index
    %11 = vector.load %arg5[%c0_15, %c0_16] : memref<288x128xf32, #tpu.memory_space<vmem>>, vector<288x128xf32>
    %12 = arith.addf %11, %10 : vector<288x128xf32>
    %c0_17 = arith.constant 0 : index
    %c0_18 = arith.constant 0 : index
    %13 = vector.load %arg5[%c0_17, %c0_18] : memref<288x128xf32, #tpu.memory_space<vmem>>, vector<288x128xf32>
    tpu.vector_store %arg5[%c0_17, %c0_18], %12 {strides = array<i32>} : memref<288x128xf32, #tpu.memory_space<vmem>>, vector<288x128xf32>,
    %c0_19 = arith.constant 0 : index
    %c0_20 = arith.constant 0 : index
    %c2 = arith.constant 2 : index
    %c0_21 = arith.constant 0 : index
    %14 = vector.load %arg1[%c0_19, %c0_20, %c2, %c0_21] : memref<1x1x328x8xbf16, #tpu.memory_space<vmem>>, vector<1x1x288x8xbf16>
    %15 = vector.shape_cast %14 : vector<1x1x288x8xbf16> to vector<288x8xbf16>
    %c2_22 = arith.constant 2 : index
    %c0_23 = arith.constant 0 : index
    %c0_24 = arith.constant 0 : index
    %16 = vector.load %arg2[%c2_22, %c0_23, %c0_24] : memref<9x8x128xbf16, #tpu.memory_space<vmem>>, vector<1x8x128xbf16>
    %17 = vector.shape_cast %16 : vector<1x8x128xbf16> to vector<8x128xbf16>
    %cst_25 = arith.constant dense<0.000000e+00> : vector<288x128xf32>
    %18 = tpu.matmul %15, %17, %cst_25 {dimension_numbers = #tpu.dot_dimension_numbers<[1], [0], [0], [1], [0, 0, 1, 1], [], []>} : vector<288x8xbf16>, vector<8x128xbf16>, vector<288x128xf32> -> vector<288x128xf32>
    %c0_26 = arith.constant 0 : index
    %c0_27 = arith.constant 0 : index
    %19 = vector.load %arg5[%c0_26, %c0_27] : memref<288x128xf32, #tpu.memory_space<vmem>>, vector<288x128xf32>
    %20 = arith.addf %19, %18 : vector<288x128xf32>
    %c0_28 = arith.constant 0 : index
    %c0_29 = arith.constant 0 : index
    %21 = vector.load %arg5[%c0_28, %c0_29] : memref<288x128xf32, #tpu.memory_space<vmem>>, vector<288x128xf32>
    tpu.vector_store %arg5[%c0_28, %c0_29], %20 {strides = array<i32>} : memref<288x128xf32, #tpu.memory_space<vmem>>, vector<288x128xf32>,
    %c0_30 = arith.constant 0 : index
    %c0_31 = arith.constant 0 : index
    %c18 = arith.constant 18 : index
    %c0_32 = arith.constant 0 : index
    %22 = vector.load %arg1[%c0_30, %c0_31, %c18, %c0_32] : memref<1x1x328x8xbf16, #tpu.memory_space<vmem>>, vector<1x1x288x8xbf16>
    %23 = vector.shape_cast %22 : vector<1x1x288x8xbf16> to vector<288x8xbf16>
    %c3 = arith.constant 3 : index
    %c0_33 = arith.constant 0 : index
    %c0_34 = arith.constant 0 : index
    %24 = vector.load %arg2[%c3, %c0_33, %c0_34] : memref<9x8x128xbf16, #tpu.memory_space<vmem>>, vector<1x8x128xbf16>
    %25 = vector.shape_cast %24 : vector<1x8x128xbf16> to vector<8x128xbf16>
    %cst_35 = arith.constant dense<0.000000e+00> : vector<288x128xf32>
    %26 = tpu.matmul %23, %25, %cst_35 {dimension_numbers = #tpu.dot_dimension_numbers<[1], [0], [0], [1], [0, 0, 1, 1], [], []>} : vector<288x8xbf16>, vector<8x128xbf16>, vector<288x128xf32> -> vector<288x128xf32>
    %c0_36 = arith.constant 0 : index
    %c0_37 = arith.constant 0 : index
    %27 = vector.load %arg5[%c0_36, %c0_37] : memref<288x128xf32, #tpu.memory_space<vmem>>, vector<288x128xf32>
    %28 = arith.addf %27, %26 : vector<288x128xf32>
    %c0_38 = arith.constant 0 : index
    %c0_39 = arith.constant 0 : index
    %29 = vector.load %arg5[%c0_38, %c0_39] : memref<288x128xf32, #tpu.memory_space<vmem>>, vector<288x128xf32>
    tpu.vector_store %arg5[%c0_38, %c0_39], %28 {strides = array<i32>} : memref<288x128xf32, #tpu.memory_space<vmem>>, vector<288x128xf32>,
    %c0_40 = arith.constant 0 : index
    %c0_41 = arith.constant 0 : index
    %c19 = arith.constant 19 : index
    %c0_42 = arith.constant 0 : index
    %30 = vector.load %arg1[%c0_40, %c0_41, %c19, %c0_42] : memref<1x1x328x8xbf16, #tpu.memory_space<vmem>>, vector<1x1x288x8xbf16>
    %31 = vector.shape_cast %30 : vector<1x1x288x8xbf16> to vector<288x8xbf16>
    %c4 = arith.constant 4 : index
    %c0_43 = arith.constant 0 : index
    %c0_44 = arith.constant 0 : index
    %32 = vector.load %arg2[%c4, %c0_43, %c0_44] : memref<9x8x128xbf16, #tpu.memory_space<vmem>>, vector<1x8x128xbf16>
    %33 = vector.shape_cast %32 : vector<1x8x128xbf16> to vector<8x128xbf16>
    %cst_45 = arith.constant dense<0.000000e+00> : vector<288x128xf32>
    %34 = tpu.matmul %31, %33, %cst_45 {dimension_numbers = #tpu.dot_dimension_numbers<[1], [0], [0], [1], [0, 0, 1, 1], [], []>} : vector<288x8xbf16>, vector<8x128xbf16>, vector<288x128xf32> -> vector<288x128xf32>
    %c0_46 = arith.constant 0 : index
    %c0_47 = arith.constant 0 : index
    %35 = vector.load %arg5[%c0_46, %c0_47] : memref<288x128xf32, #tpu.memory_space<vmem>>, vector<288x128xf32>
    %36 = arith.addf %35, %34 : vector<288x128xf32>
    %c0_48 = arith.constant 0 : index
    %c0_49 = arith.constant 0 : index
    %37 = vector.load %arg5[%c0_48, %c0_49] : memref<288x128xf32, #tpu.memory_space<vmem>>, vector<288x128xf32>
    tpu.vector_store %arg5[%c0_48, %c0_49], %36 {strides = array<i32>} : memref<288x128xf32, #tpu.memory_space<vmem>>, vector<288x128xf32>,
    %c0_50 = arith.constant 0 : index
    %c0_51 = arith.constant 0 : index
    %c20 = arith.constant 20 : index
    %c0_52 = arith.constant 0 : index
    %38 = vector.load %arg1[%c0_50, %c0_51, %c20, %c0_52] : memref<1x1x328x8xbf16, #tpu.memory_space<vmem>>, vector<1x1x288x8xbf16>
    %39 = vector.shape_cast %38 : vector<1x1x288x8xbf16> to vector<288x8xbf16>
    %c5 = arith.constant 5 : index
    %c0_53 = arith.constant 0 : index
    %c0_54 = arith.constant 0 : index
    %40 = vector.load %arg2[%c5, %c0_53, %c0_54] : memref<9x8x128xbf16, #tpu.memory_space<vmem>>, vector<1x8x128xbf16>
    %41 = vector.shape_cast %40 : vector<1x8x128xbf16> to vector<8x128xbf16>
    %cst_55 = arith.constant dense<0.000000e+00> : vector<288x128xf32>
    %42 = tpu.matmul %39, %41, %cst_55 {dimension_numbers = #tpu.dot_dimension_numbers<[1], [0], [0], [1], [0, 0, 1, 1], [], []>} : vector<288x8xbf16>, vector<8x128xbf16>, vector<288x128xf32> -> vector<288x128xf32>
    %c0_56 = arith.constant 0 : index
    %c0_57 = arith.constant 0 : index
    %43 = vector.load %arg5[%c0_56, %c0_57] : memref<288x128xf32, #tpu.memory_space<vmem>>, vector<288x128xf32>
    %44 = arith.addf %43, %42 : vector<288x128xf32>
    %c0_58 = arith.constant 0 : index
    %c0_59 = arith.constant 0 : index
    %45 = vector.load %arg5[%c0_58, %c0_59] : memref<288x128xf32, #tpu.memory_space<vmem>>, vector<288x128xf32>
    tpu.vector_store %arg5[%c0_58, %c0_59], %44 {strides = array<i32>} : memref<288x128xf32, #tpu.memory_space<vmem>>, vector<288x128xf32>,
    %c0_60 = arith.constant 0 : index
    %c0_61 = arith.constant 0 : index
    %c36 = arith.constant 36 : index
    %c0_62 = arith.constant 0 : index
    %46 = vector.load %arg1[%c0_60, %c0_61, %c36, %c0_62] : memref<1x1x328x8xbf16, #tpu.memory_space<vmem>>, vector<1x1x288x8xbf16>
    %47 = vector.shape_cast %46 : vector<1x1x288x8xbf16> to vector<288x8xbf16>
    %c6 = arith.constant 6 : index
    %c0_63 = arith.constant 0 : index
    %c0_64 = arith.constant 0 : index
    %48 = vector.load %arg2[%c6, %c0_63, %c0_64] : memref<9x8x128xbf16, #tpu.memory_space<vmem>>, vector<1x8x128xbf16>
    %49 = vector.shape_cast %48 : vector<1x8x128xbf16> to vector<8x128xbf16>
    %cst_65 = arith.constant dense<0.000000e+00> : vector<288x128xf32>
    %50 = tpu.matmul %47, %49, %cst_65 {dimension_numbers = #tpu.dot_dimension_numbers<[1], [0], [0], [1], [0, 0, 1, 1], [], []>} : vector<288x8xbf16>, vector<8x128xbf16>, vector<288x128xf32> -> vector<288x128xf32>
    %c0_66 = arith.constant 0 : index
    %c0_67 = arith.constant 0 : index
    %51 = vector.load %arg5[%c0_66, %c0_67] : memref<288x128xf32, #tpu.memory_space<vmem>>, vector<288x128xf32>
    %52 = arith.addf %51, %50 : vector<288x128xf32>
    %c0_68 = arith.constant 0 : index
    %c0_69 = arith.constant 0 : index
    %53 = vector.load %arg5[%c0_68, %c0_69] : memref<288x128xf32, #tpu.memory_space<vmem>>, vector<288x128xf32>
    tpu.vector_store %arg5[%c0_68, %c0_69], %52 {strides = array<i32>} : memref<288x128xf32, #tpu.memory_space<vmem>>, vector<288x128xf32>,
    %c0_70 = arith.constant 0 : index
    %c0_71 = arith.constant 0 : index
    %c37 = arith.constant 37 : index
    %c0_72 = arith.constant 0 : index
    %54 = vector.load %arg1[%c0_70, %c0_71, %c37, %c0_72] : memref<1x1x328x8xbf16, #tpu.memory_space<vmem>>, vector<1x1x288x8xbf16>
    %55 = vector.shape_cast %54 : vector<1x1x288x8xbf16> to vector<288x8xbf16>
    %c7 = arith.constant 7 : index
    %c0_73 = arith.constant 0 : index
    %c0_74 = arith.constant 0 : index
    %56 = vector.load %arg2[%c7, %c0_73, %c0_74] : memref<9x8x128xbf16, #tpu.memory_space<vmem>>, vector<1x8x128xbf16>
    %57 = vector.shape_cast %56 : vector<1x8x128xbf16> to vector<8x128xbf16>
    %cst_75 = arith.constant dense<0.000000e+00> : vector<288x128xf32>
    %58 = tpu.matmul %55, %57, %cst_75 {dimension_numbers = #tpu.dot_dimension_numbers<[1], [0], [0], [1], [0, 0, 1, 1], [], []>} : vector<288x8xbf16>, vector<8x128xbf16>, vector<288x128xf32> -> vector<288x128xf32>
    %c0_76 = arith.constant 0 : index
    %c0_77 = arith.constant 0 : index
    %59 = vector.load %arg5[%c0_76, %c0_77] : memref<288x128xf32, #tpu.memory_space<vmem>>, vector<288x128xf32>
    %60 = arith.addf %59, %58 : vector<288x128xf32>
    %c0_78 = arith.constant 0 : index
    %c0_79 = arith.constant 0 : index
    %61 = vector.load %arg5[%c0_78, %c0_79] : memref<288x128xf32, #tpu.memory_space<vmem>>, vector<288x128xf32>
    tpu.vector_store %arg5[%c0_78, %c0_79], %60 {strides = array<i32>} : memref<288x128xf32, #tpu.memory_space<vmem>>, vector<288x128xf32>,
    %c0_80 = arith.constant 0 : index
    %c0_81 = arith.constant 0 : index
    %c38 = arith.constant 38 : index
    %c0_82 = arith.constant 0 : index
    %62 = vector.load %arg1[%c0_80, %c0_81, %c38, %c0_82] : memref<1x1x328x8xbf16, #tpu.memory_space<vmem>>, vector<1x1x288x8xbf16>
    %63 = vector.shape_cast %62 : vector<1x1x288x8xbf16> to vector<288x8xbf16>
    %c8 = arith.constant 8 : index
    %c0_83 = arith.constant 0 : index
    %c0_84 = arith.constant 0 : index
    %64 = vector.load %arg2[%c8, %c0_83, %c0_84] : memref<9x8x128xbf16, #tpu.memory_space<vmem>>, vector<1x8x128xbf16>
    %65 = vector.shape_cast %64 : vector<1x8x128xbf16> to vector<8x128xbf16>
    %cst_85 = arith.constant dense<0.000000e+00> : vector<288x128xf32>
    %66 = tpu.matmul %63, %65, %cst_85 {dimension_numbers = #tpu.dot_dimension_numbers<[1], [0], [0], [1], [0, 0, 1, 1], [], []>} : vector<288x8xbf16>, vector<8x128xbf16>, vector<288x128xf32> -> vector<288x128xf32>
    %c0_86 = arith.constant 0 : index
    %c0_87 = arith.constant 0 : index
    %67 = vector.load %arg5[%c0_86, %c0_87] : memref<288x128xf32, #tpu.memory_space<vmem>>, vector<288x128xf32>
    %68 = arith.addf %67, %66 : vector<288x128xf32>
    %c0_88 = arith.constant 0 : index
    %c0_89 = arith.constant 0 : index
    %69 = vector.load %arg5[%c0_88, %c0_89] : memref<288x128xf32, #tpu.memory_space<vmem>>, vector<288x128xf32>
    tpu.vector_store %arg5[%c0_88, %c0_89], %68 {strides = array<i32>} : memref<288x128xf32, #tpu.memory_space<vmem>>, vector<288x128xf32>,
    %c0_90 = arith.constant 0 : index
    %c0_91 = arith.constant 0 : index
    %70 = vector.load %arg5[%c0_90, %c0_91] : memref<288x128xf32, #tpu.memory_space<vmem>>, vector<288x128xf32>
    %c0_92 = arith.constant 0 : index
    %c0_93 = arith.constant 0 : index
    %71 = vector.load %arg3[%c0_92, %c0_93] : memref<1x128xf32, #tpu.memory_space<vmem>>, vector<1x128xf32>
    %72 = vector.broadcast %71 : vector<1x128xf32> to vector<288x128xf32>
    %73 = arith.addf %70, %72 : vector<288x128xf32>
    %cst_94 = arith.constant 0.000000e+00 : f32
    %74 = vector.broadcast %cst_94 : f32 to vector<288x128xf32>
    %75 = arith.cmpf oge, %73, %74 : vector<288x128xf32>
    %cst_95 = arith.constant 0.00999999977 : f32
    %76 = vector.broadcast %cst_95 : f32 to vector<288x128xf32>
    %77 = arith.mulf %76, %73 : vector<288x128xf32>
    %78 = arith.select %75, %73, %77 : vector<288x128xi1>, vector<288x128xf32>
    %79 = arith.truncf %78 : vector<288x128xf32> to vector<288x128xbf16>
    %c0_96 = arith.constant 0 : index
    %c0_97 = arith.constant 0 : index
    %c0_98 = arith.constant 0 : index
    %80 = vector.load %arg4[%c0_96, %c0_97, %c0_98] : memref<1x288x128xbf16, #tpu.memory_space<vmem>>, vector<1x288x128xbf16>
    %81 = vector.shape_cast %80 : vector<1x288x128xbf16> to vector<288x128xbf16>
    %82 = vector.shape_cast %79 : vector<288x128xbf16> to vector<1x288x128xbf16>
    tpu.vector_store %arg4[%c0_96, %c0_97, %c0_98], %82 {strides = array<i32>} : memref<1x288x128xbf16, #tpu.memory_space<vmem>>, vector<1x288x128xbf16>,
    return
  }
  func.func @transform_0(%arg0: i32) -> (i32, i32, i32, i32) {
    %c0_i32 = arith.constant 0 : i32
    %c0_i32_0 = arith.constant 0 : i32
    %c0_i32_1 = arith.constant 0 : i32
    %c0_i32_2 = arith.constant 0 : i32
    return %arg0, %c0_i32, %c0_i32_0, %c0_i32_1 : i32, i32, i32, i32
  }
  func.func @transform_1(%arg0: i32) -> (i32, i32, i32) {
    %c0_i32 = arith.constant 0 : i32
    %c0_i32_0 = arith.constant 0 : i32
    %c0_i32_1 = arith.constant 0 : i32
    %c0_i32_2 = arith.constant 0 : i32
    return %c0_i32, %c0_i32_0, %c0_i32_1 : i32, i32, i32
  }
  func.func @transform_2(%arg0: i32) -> (i32, i32) {
    %c0_i32 = arith.constant 0 : i32
    %c0_i32_0 = arith.constant 0 : i32
    %c0_i32_1 = arith.constant 0 : i32
    return %c0_i32, %c0_i32_0 : i32, i32
  }
  func.func @transform_3(%arg0: i32) -> (i32, i32, i32) {
    %c0_i32 = arith.constant 0 : i32
    %c0_i32_0 = arith.constant 0 : i32
    %c0_i32_1 = arith.constant 0 : i32
    return %arg0, %c0_i32, %c0_i32_0 : i32, i32, i32
  }
}

</mosaic_0001>

<bundles_post_ra>
// kernel: tpu_custom_call.1
= control target key start
LH: loop header
LB: loop body
LE: loop exit
PB: predicated region body
PF: predicated region fallthrough
CT: control target
= control target key end

     0   :  { %8 = vsyncpa [#allocation4], 0  ;;  %s7934_s0 = inlined_call_operand.vmem [shape: bf16[2,1,328,8], index: 0, kind: input, shape index: {}]   ;;  %s7935_s1 = inlined_call_operand.vmem [shape: bf16[9,8,128], index: 1, kind: input, shape index: {}]   ;;  %s7936_s2 = inlined_call_operand.vmem [shape: f32[1,128], index: 2, kind: input, shape index: {}]   ;;  %s7937_s3 = inlined_call_operand.hbm [shape: bf16[2,288,128], index: 3, kind: output, shape index: {}]  }
   0x1   :  { %10 = vsyncpa [#allocation4 + $0x1], 0  ;;  %s7126_s12 = smov 0   ;;  %s7128_s13 = smov 0  }
   0x2   :  { %s7130_s14 = smov 0   ;;  %s7132_s15 = smov 0  }
   0x3 LB: > { %s7147_s16 = sadd.s32 4294967295, %s7101_s15   ;;  %s5483_s17 = sadd.s32 4294967294, %s7101_s15   ;;  %s7101_s15 = sphi %s7132_s15, %s7943_s15   ;;  %s7097_s14 = sphi %s7130_s14, %s7942_s14   ;;  %s7093_s13 = sphi %s7128_s13, %s7941_s13   ;;  %s7089_s12 = sphi %s7126_s12, %s7940_s12  }
   0x4   : > { %s7151_s18 = sadd.s32 1, %s7101_s15   ;;  %s91_s19 = sadd.s32 1, %s7097_s14 }
   0x5   : > { %s88_s20 = ssub.s32 %s7101_s15, %s7151_s18  ;;  %p101_p0 = scmp.ne.s32.totalorder %s7097_s14, %s7093_s13 }
   0x6   : > { %p89_p1 = scmp.eq.s32.totalorder %s88_s20, 0  ;;  %p102_p2 = scmp.eq.s32.totalorder %s7147_s16, 1 }
   0x7   : > { %p107_p3 = scmp.ne.s32.totalorder %s7093_s13, %s7089_s12  ;;  %p108_p4 = scmp.eq.s32.totalorder %s5483_s17, 1 }
   0x8   : > { %s7162_s21 = scalar_select %p89_p1, %s7097_s14, %s91_s19  }
   0x9   : > { %p7164_p5 = por %p102_p2, %p101_p0  ;;  %p7168_p6 = por %p108_p4, %p107_p3 }
   0xa   : > { %p5486_p7 = scmp.ge.s32.totalorder %s7101_s15, 1  ;;  %p140_p8 = scmp.lt.s32.totalorder %s7101_s15, 3 }
   0xc   : > { %p141_p9 = pnand %p5486_p7, %p140_p8 }
   0xd   : > { %v206_v0 = vld [vmem:[%s7935_s1] sm:$0xf] (!%p141_p9)  ;;  %vm352_vm0 = vcmask (!%p141_p9), 1043456   ;;  %p164_p10 = scmp.lt.s32.totalorder (!%p141_p9), %s7147_s16, 1  ;;  %v5638_v2 = vld [vmem:[%s7935_s1 + $0x10] sm:$0xf] (!%p141_p9) }
   0xe   : > { %144 = sbr.rel (%p141_p9) target bundleno = 595 (0x253), region = 32  ;;  %6814 = vmatprep.subr.msk.bf16.mxu1 (!%p141_p9), %vm352_vm0, %v206_v0  ;;  %v354_v1 = vsel (!%p141_p9), %vm352_vm0, %v206_v0, 0  ;;  %6818 = vmatprep.subr.msk.bf16.mxu0 (!%p141_p9), %vm352_vm0, %v5638_v2  ;;  %v7186_v3 = vsel (!%p141_p9), %vm352_vm0, %v5638_v2, 0  ;;  %v5676_v4 = vld [vmem:[%s7935_s1 + $0x14] sm:$0xf] (!%p141_p9)  ;;  %vm297_vm1 = vcmask (!%p141_p9), 64512  }
   0xf   : > { %6183 = vmatpush3.bf16.msra.mxu1 (!%p141_p9), %v354_v1  ;;  %v5524_v5 = vld [vmem:[%s7935_s1 + $0x4] sm:$0xf] (!%p141_p9)  ;;  %6335 = vmatpush3.bf16.msra.mxu0 (!%p141_p9), %v7186_v3  ;;  %vm2347_vm2 = vsmask.f32 (!%p141_p9), 6400  ;;  %v7206_v7 = vld [vmem:[%s7935_s1 + $0x8] sm:$0xf] (!%p141_p9) }
  0x10   : > { %6815 = vmatprep.subr.msk.bf16.mxu1 (!%p141_p9), %vm352_vm0, %v5524_v5  ;;  %6820 = vmatprep.subr.msk.bf16.mxu0 (!%p141_p9), %vm352_vm0, %v5676_v4  ;;  %v905_v9 = vsel (!%p141_p9), %vm352_vm0, %v5524_v5, 0  ;;  %v3085_v18 = vsel (!%p141_p9), %vm352_vm0, %v5676_v4, 0  ;;  %v7231_v40 = vld [vmem:[%s7935_s1 + $0x18] sm:$0xf] (!%p141_p9)  ;;  %vm2992_vm3 = vcmask (!%p141_p9), 1045504   ;;  %vm1324_vm5 = vcmask (!%p141_p9), 1046528  }
  0x11   : > { %vm701_vm4 = vsmask.f32 (!%p141_p9), 7424  ;;  %vm4015_vm6 = vsmask.f32 (!%p141_p9), 5376  ;;  %vm4660_vm7 = vcmask (!%p141_p9), 1044480   ;;  %s7103_s24 = smov (!%p141_p9), [#allocation3]  }
  0x12   : > { %s7043_s25 = sshll.u32 (!%p141_p9), %s7103_s24, 4  ;;  %s7044_s25 = int_to_ptr.vmem [resolvable:$false] %s7043_s25 }
  0x13   : > { %s7045_s26 = scalar_lea.vmem (!%p141_p9), %s7044_s25, 4608 }
  0x15   : > { %s165_s28 = scalar_select %p164_p10, %s7147_s16, 1 }
  0x17   : > { %s6825_s6 = smul.u32 164, %s165_s28 }
  0x19   : > { %s7200_s9 = scalar_lea.vmem %s7934_s0, %s6825_s6  ;;  %s161_s6 = sand.u32 1, %s7093_s13  }
  0x1a   : > { %v6868_v6 = vld [vmem:[%s7200_s9] sm:$0xff]   ;;  %v6869_v8 = vld [vmem:[%s7200_s9 + $0x8] sm:$0xff]   ;;  %v6871_v11 = vld [vmem:[%s7200_s9 + $0x10] sm:$0xff]   ;;  %s6824_s7 = smul.u32 144, %s161_s6 }
  0x1b   : > { %6184 = vmatprep.mubr.msk.bf16.mxu1 %vm297_vm1, %v6868_v6  ;;  %v6870_v10 = vld [vmem:[%s7200_s9 + $0x8] sm:$0xfe]   ;;  %v6872_v12 = vld [vmem:[%s7200_s9 + $0x10] sm:$0xff]   ;;  %v2357_v15 = vshrl.u32 %v6871_v11, 16  ;;  %v2360_v16 = vshll.u32 %v6871_v11, 16  ;;  %v6873_v17 = vld [vmem:[%s7200_s9 + $0x18] sm:$0xff]  }
  0x1c   : > { %6185 = vmatmul.mubr.msk.bf16.vlgmr.msra.gmra.mrb[0].mxu1 %vm297_vm1, %v6869_v8  ;;  %v2349_v13 = vshrl.u32 %v6870_v10, 16  ;;  %v2352_v14 = vshll.u32 %v6870_v10, 16  ;;  %v2366_v23 = vshrl.u32 %v6873_v17, 16  ;;  %v2369_v24 = vshll.u32 %v6873_v17, 16  ;;  %v6874_v25 = vld [vmem:[%s7200_s9 + $0x18] sm:$0xff]   ;;  %v6875_v26 = vld [vmem:[%s7200_s9 + $0x20] sm:$0xff]  }
  0x1d   : > { %6221 = vmatpush3.bf16.msra.mxu1 %v905_v9  ;;  %6188 = vmatprep.mubr.msk.bf16.mxu1 %vm297_vm1, %v6872_v12  ;;  %v2359_v21 = vrot.slane %v2357_v15, 1  ;;  %v2362_v22 = vrot.slane %v2360_v16, 2  ;;  %v2375_v31 = vshrl.u32 %v6875_v26, 16  ;;  %v2378_v32 = vshll.u32 %v6875_v26, 16  ;;  %v6876_v33 = vld [vmem:[%s7200_s9 + $0x20] sm:$0xff]   ;;  %v6877_v34 = vld [vmem:[%s7200_s9 + $0x28] sm:$0xff]  }
  0x1e   : > { %6816 = vmatprep.subr.msk.bf16.mxu1 %vm352_vm0, %v7206_v7  ;;  %v2351_v19 = vrot.slane %v2349_v13, 1  ;;  %v2354_v20 = vrot.slane %v2352_v14, 2  ;;  %v2368_v29 = vrot.slane %v2366_v23, 1  ;;  %v2371_v30 = vrot.slane %v2369_v24, 2  ;;  %v6878_v42 = vld [vmem:[%s7200_s9 + $0x28] sm:$0xff]   ;;  %v6879_v43 = vld [vmem:[%s7200_s9 + $0x30] sm:$0xff]  }
  0x1f   : > { %v2363_v28 = vor.u32 %v2362_v22, %v2359_v21  ;;  %v2377_v37 = vrot.slane %v2375_v31, 1  ;;  %v2380_v38 = vrot.slane %v2378_v32, 2  ;;  %v2384_v39 = vshrl.u32 %v6877_v34, 16  ;;  %v6880_v47 = vld [vmem:[%s7200_s9 + $0x30] sm:$0xff]   ;;  %v6881_v51 = vld [vmem:[%s7200_s9 + $0x38] sm:$0xff]   ;;  %v6883_v58 = vld [vmem:[%s7200_s9 + $0x40] sm:$0xff]  }
  0x20   : > { %v2355_v27 = vor.u32 %v2354_v20, %v2351_v19  ;;  %v2372_v36 = vor.u32 %v2371_v30, %v2368_v29  ;;  %v2387_v41 = vshll.u32 %v6877_v34, 16  ;;  %v2393_v49 = vshrl.u32 %v6879_v43, 16  ;;  %v6885_v1 = vld [vmem:[%s7200_s9 + $0x48] sm:$0xff]   ;;  %v6882_v4 = vld [vmem:[%s7200_s9 + $0x38] sm:$0xff]   ;;  %v6887_v8 = vld [vmem:[%s7200_s9 + $0x50] sm:$0xff]   ;;  %s7771_s8 = scalar_lea.vmem [#allocation3], %s6824_s7 }
  0x21   : > { %v2381_v45 = vor.u32 %v2380_v38, %v2377_v37  ;;  %v2386_v46 = vrot.slane %v2384_v39, 1  ;;  %v2396_v50 = vshll.u32 %v6879_v43, 16  ;;  %v2402_v56 = vshrl.u32 %v6881_v51, 16  ;;  %v6884_v12 = vld [vmem:[%s7200_s9 + $0x40] sm:$0xff]   ;;  %v6886_v23 = vld [vmem:[%s7200_s9 + $0x48] sm:$0xff]   ;;  %v6888_v24 = vld [vmem:[%s7200_s9 + $0x50] sm:$0xff]  }
  0x22   : > { %v2364_v35 = vsel %vm2347_vm2, %v2355_v27, %v2363_v28  ;;  %v2373_v44 = vsel %vm2347_vm2, %v2363_v28, %v2372_v36  ;;  %v2389_v48 = vrot.slane %v2387_v41, 2  ;;  %v2395_v54 = vrot.slane %v2393_v49, 1  ;;  %v6892_v29 = vld [vmem:[%s7200_s9 + $0x10] sm:$0xff]   ;;  %v6891_v34 = vld [vmem:[%s7200_s9 + $0x8] sm:$0xfc]   ;;  %v6893_v37 = vld [vmem:[%s7200_s9 + $0x60] sm:$0xff]  }
  0x23   : > { %6336 = vmatprep.mubr.msk.bf16.mxu0 %vm297_vm1, %v2364_v35  ;;  %v2382_v52 = vsel %vm2347_vm2, %v2372_v36, %v2381_v45  ;;  %v2398_v55 = vrot.slane %v2396_v50, 2  ;;  %v2405_v57 = vshll.u32 %v6881_v51, 16  ;;  %v2404_v60 = vrot.slane %v2402_v56, 1  ;;  %v6890_v35 = vld [vmem:[%s7200_s9 + $0x58] sm:$0xff]   ;;  %v6905_v49 = vld [vmem:[%s7200_s9] sm:$0xff]   ;;  %v6898_v50 = vld [vmem:[%s7200_s9 + $0x28] sm:$0xff]  }
  0x24   : > { %6189 = vmatmul.mubr.msk.bf16.gmra.mrb[4].mxu1 %vm297_vm1, %v6874_v25  ;;  %6337 = vmatmul.mubr.msk.bf16.vlgmr.msra.gmra.mrb[0].mxu0 %vm297_vm1, %v2373_v44  ;;  %v2390_v53 = vor.u32 %v2389_v48, %v2386_v46  ;;  %v2411_v63 = vshrl.u32 %v6883_v58, 16  ;;  %v2414_v0 = vshll.u32 %v6883_v58, 16  ;;  %v2420_v9 = vshrl.u32 %v6885_v1, 16  ;;  %v6896_v44 = vld [vmem:[%s7200_s9 + $0x20] sm:$0xff]   ;;  %s5421_s10 = sshll.u32 %s7771_s8, 4  ;;  %s7887_s10 = int_to_ptr.vmem [resolvable:$true] %s5421_s10 }
  0x25   : > { %6192 = vmatprep.mubr.msk.bf16.mxu1 %vm297_vm1, %v6876_v33  ;;  %6373 = vmatpush3.bf16.msra.mxu0 %v3085_v18  ;;  %v2399_v59 = vor.u32 %v2398_v55, %v2395_v54  ;;  %v2407_v62 = vrot.slane %v2405_v57, 2  ;;  %v2423_v10 = vshll.u32 %v6885_v1, 16  ;;  %v2429_v14 = vshrl.u32 %v6887_v8, 16  ;;  %v6889_v18 = vld [vmem:[%s7200_s9 + $0x58] sm:$0xff]   ;;  %v6900_v55 = vld [vmem:[%s7200_s9 + $0x30] sm:$0xff]   ;;  %s7039_s20 = scalar_lea.vmem %s7887_s10, 2304  ;;  %p7046_p0 = scmp.lt.s32.totalorder %s7887_s10, %s7044_s25 }
  0x26   : > { %6340 = vmatprep.mubr.msk.bf16.mxu0 %vm297_vm1, %v2382_v52  ;;  %6821 = vmatprep.subr.msk.bf16.mxu0 %vm352_vm0, %v7231_v40  ;;  %v2391_v61 = vsel %vm2347_vm2, %v2381_v45, %v2390_v53  ;;  %v2413_v5 = vrot.slane %v2411_v63, 1  ;;  %v2416_v6 = vrot.slane %v2414_v0, 2  ;;  %v2432_v15 = vshll.u32 %v6887_v8, 16  ;;  %v6895_v45 = vld [vmem:[%s7200_s9 + $0x68] sm:$0xff]   ;;  %v7299_v57 = vld [vmem:[%s7935_s1 + $0x1c] sm:$0xf]  ;;  %p7040_p11 = scmp.ne.s32.totalorder %s7887_s10, %s7039_s20  ;;  %p7047_p1 = scmp.lt.s32.totalorder %s7045_s26, %s7039_s20 }
  0x27   : > { %v2400_v2 = vsel %vm2347_vm2, %v2390_v53, %v2399_v59  ;;  %v2408_v11 = vor.u32 %v2407_v62, %v2404_v60  ;;  %v2422_v16 = vrot.slane %v2420_v9, 1  ;;  %v2425_v17 = vrot.slane %v2423_v10, 2  ;;  %v6906_v53 = vld [vmem:[%s7200_s9 + $0x8] sm:$0xff]   ;;  %v6902_v0 = vld [vmem:[%s7200_s9 + $0x38] sm:$0xff]   ;;  %v6908_v1 = vld [vmem:[%s7200_s9 + $0x10] sm:$0xff]  }
  0x28   : > { %v2417_v13 = vor.u32 %v2416_v6, %v2413_v5  ;;  %v2431_v21 = vrot.slane %v2429_v14, 1  ;;  %v2434_v22 = vrot.slane %v2432_v15, 2  ;;  %v2438_v26 = vshrl.u32 %v6889_v18, 16  ;;  %v6910_v6 = vld [vmem:[%s7200_s9 + $0x18] sm:$0xff]   ;;  %v6903_v10 = vld [vmem:[%s7200_s9 + $0x88] sm:$0xff]   ;;  %p7041_p12 = pnand %p7040_p11, %p7164_p5  ;;  %p7048_p2 = por %p7047_p1, %p7046_p0 }
  0x29   : > { %v2409_v19 = vsel %vm2347_vm2, %v2399_v59, %v2408_v11  ;;  %v2426_v25 = vor.u32 %v2425_v17, %v2422_v16  ;;  %v2441_v27 = vshll.u32 %v6889_v18, 16  ;;  %v2993_v38 = vrot.slane %v6891_v34, 2  ;;  %v6899_v59 = vld [vmem:[%s7200_s9 + $0x78] sm:$0xff]   ;;  %v6907_v18 = vld [vmem:[%s7200_s9 + $0x48] sm:$0xff]  }
  0x2a   : > { %v2418_v20 = vsel %vm2347_vm2, %v2408_v11, %v2417_v13  ;;  %v2435_v28 = vor.u32 %v2434_v22, %v2431_v21  ;;  %v2440_v31 = vrot.slane %v2438_v26, 1  ;;  %v2994_v39 = vrot.slane %v6892_v29, 2  ;;  %p7042_p13 = pneg %p7041_p12 }
  0x2b   : > { %v2427_v30 = vsel %vm2347_vm2, %v2417_v13, %v2426_v25  ;;  %v2443_v32 = vrot.slane %v2441_v27, 2  ;;  %v2998_v48 = vrot.slane %v6896_v44, 2  ;;  %v3596_v52 = vsel %vm352_vm0, %v7231_v40, 0  ;;  %v6901_v40 = vld [vmem:[%s7200_s9 + $0x80] sm:$0xff]   ;;  %v6914_v27 = vld [vmem:[%s7200_s9 + $0x28] sm:$0xff]   ;;  %v6918_v44 = vld [vmem:[%s7200_s9 + $0x38] sm:$0xff]  }
  0x2c   : > { %6193 = vmatmul.mubr.msk.bf16.gmra.mrb[8].mxu1 %vm297_vm1, %v6878_v42  ;;  %6341 = vmatmul.mubr.msk.bf16.gmra.mrb[4].mxu0 %vm297_vm1, %v2391_v61  ;;  %v2436_v33 = vsel %vm2347_vm2, %v2426_v25, %v2435_v28  ;;  %v6894_v42 = vld [vmem:[%s7200_s9 + $0x18] sm:$0xff]   ;;  %v2995_v43 = vsel %vm2992_vm3, %v2993_v38, %v2994_v39  ;;  %v705_v56 = vshll.u32 %v6905_v49, 16  ;;  %v3000_v58 = vrot.slane %v6898_v50, 2  ;;  %p7049_p3 = pnand %p7048_p2, %p7042_p13 }
  0x2d   : > { %6196 = vmatprep.mubr.msk.bf16.mxu1 %vm297_vm1, %v6880_v47  ;;  %6344 = vmatprep.mubr.msk.bf16.mxu0 %vm297_vm1, %v2400_v2  ;;  %v7272_v36 = vor.u32 %v2443_v32, %v2440_v31  ;;  %v2996_v46 = vrot.slane %v6894_v42, 2  ;;  %v6897_v47 = vld [vmem:[%s7200_s9 + $0x70] sm:$0xff]   ;;  %v710_v60 = vshll.u32 %v6906_v53, 16  ;;  %v3002_v61 = vrot.slane %v6900_v55, 2  ;;  %v6911_v38 = vld [vmem:[%s7200_s9 + $0x58] sm:$0xff]  }
  0x2e   : > { %v703_v62 = vshrl.u32 %v6905_v49, 16  ;;  %v707_v63 = vrot.slane %v705_v56, 1  ;;  %v3001_v2 = vsel %vm2992_vm3, %v2998_v48, %v3000_v58  ;;  %v718_v11 = vshll.u32 %v6908_v1, 16  ;;  %v6915_v56 = vld [vmem:[%s7200_s9 + $0x68] sm:$0xff]  }
  0x2f   : > { %v2445_v41 = vsel %vm2347_vm2, %v2435_v28, %v7272_v36  ;;  %v2997_v51 = vsel %vm2992_vm3, %v2994_v39, %v2996_v46  ;;  %v2999_v54 = vsel %vm2992_vm3, %v2996_v46, %v2998_v48  ;;  %v712_v5 = vrot.slane %v710_v60, 1 }
  0x30   : > { %v3003_v8 = vsel %vm2992_vm3, %v3000_v58, %v3002_v61  ;;  %v708_v9 = vor.u32 %v707_v63, %v703_v62  ;;  %v714_v13 = vshrl.u32 %v6906_v53, 16  ;;  %v722_v16 = vshrl.u32 %v6908_v1, 16  ;;  %v6922_v1 = vld [vmem:[%s7200_s9 + $0x48] sm:$0xff]  }
  0x31   : > { %v726_v17 = vshll.u32 %v6910_v6, 16  ;;  %v1417_v28 = vsel %vm352_vm0, %v7206_v7, 0  ;;  %v3008_v29 = vrot.slane %v6907_v18, 2  ;;  %v6913_v7 = vld [vmem:[%s7200_s9 + $0x60] sm:$0xff]   ;;  %v3012_v48 = vrot.slane %v6911_v38, 2 }
  0x32   : > { %v713_v15 = vsel %vm701_vm4, %v708_v9, %v712_v5  ;;  %v716_v22 = vor.u32 %v714_v13, %v712_v5  ;;  %v3014_v49 = vrot.slane %v6913_v7, 2 }
  0x33   : > { %v728_v26 = vrot.slane %v726_v17, 1  ;;  %v6921_v17 = vld [vmem:[%s7200_s9 + $0x80] sm:$0xff]  }
  0x34   : > { %6197 = vmatmul.mubr.msk.bf16.gmra.mrb[12].mxu1 %vm297_vm1, %v6882_v4  ;;  %6345 = vmatmul.mubr.msk.bf16.gmra.mrb[8].mxu0 %vm297_vm1, %v2409_v19  ;;  %v6904_v4 = vld [vmem:[%s7200_s9 + $0x40] sm:$0xff]   ;;  %v720_v19 = vrot.slane %v718_v11, 1  ;;  %v3015_v62 = vsel %vm2992_vm3, %v3012_v48, %v3014_v49  ;;  %v774_v11 = vshll.u32 %v6922_v1, 16 }
  0x35   : > { %6200 = vmatprep.mubr.msk.bf16.mxu1 %vm297_vm1, %v6884_v12  ;;  %6348 = vmatprep.mubr.msk.bf16.mxu0 %vm297_vm1, %v2418_v20  ;;  %v3004_v12 = vrot.slane %v6902_v0, 2  ;;  %v3006_v14 = vrot.slane %v6904_v4, 2  ;;  %v6912_v20 = vld [vmem:[%s7200_s9 + $0x20] sm:$0xff]  }
  0x36   : > { %v724_v25 = vor.u32 %v722_v16, %v720_v19  ;;  %v721_v31 = vsel %vm701_vm4, %v716_v22, %v720_v19  ;;  %v7368_v22 = vld [vmem:[%s7935_s1 + $0xc] sm:$0xf] }
  0x37   : > { %v3005_v21 = vsel %vm2992_vm3, %v3002_v61, %v3004_v12  ;;  %v3009_v42 = vsel %vm2992_vm3, %v3006_v14, %v3008_v29  ;;  %v6917_v61 = vld [vmem:[%s7200_s9 + $0x70] sm:$0xff]  }
  0x38   : > { %v729_v34 = vsel %vm701_vm4, %v724_v25, %v728_v26 }
  0x3c   : > { %6201 = vmatmul.mubr.msk.bf16.gmra.mrb[16].mxu1 %vm297_vm1, %v6886_v23  ;;  %6349 = vmatmul.mubr.msk.bf16.gmra.mrb[12].mxu0 %vm297_vm1, %v2427_v30  ;;  %v6909_v23 = vld [vmem:[%s7200_s9 + $0x50] sm:$0xff]   ;;  %v734_v30 = vshll.u32 %v6912_v20, 16 }
  0x3d   : > { %6204 = vmatprep.mubr.msk.bf16.mxu1 %vm297_vm1, %v6888_v24  ;;  %6352 = vmatprep.mubr.msk.bf16.mxu0 %vm297_vm1, %v2436_v33  ;;  %v3007_v24 = vsel %vm2992_vm3, %v3004_v12, %v3006_v14  ;;  %v3010_v32 = vrot.slane %v6909_v23, 2  ;;  %v730_v33 = vshrl.u32 %v6910_v6, 16  ;;  %v3018_v6 = vrot.slane %v6917_v61, 2  ;;  %v6919_v12 = vld [vmem:[%s7200_s9 + $0x78] sm:$0xff]   ;;  %v6924_v14 = vld [vmem:[%s7200_s9 + $0x50] sm:$0xff]  }
  0x3e   : > { %v736_v39 = vrot.slane %v734_v30, 1  ;;  %v782_v23 = vshll.u32 %v6924_v14, 16 }
  0x44   : > { %6205 = vmatmul.mubr.msk.bf16.gmra.mrb[20].mxu1 %vm297_vm1, %v6890_v35  ;;  %6353 = vmatmul.mubr.msk.bf16.gmra.mrb[16].mxu0 %vm297_vm1, %v2445_v41  ;;  %v738_v35 = vshrl.u32 %v6912_v20, 16  ;;  %v6916_v41 = vld [vmem:[%s7200_s9 + $0x30] sm:$0xff]   ;;  %v776_v20 = vrot.slane %v774_v11, 1  ;;  %v6932_v11 = vld [vmem:[%s7200_s9 + $0x20] sm:$0xff]  }
  0x45   : > { %6208 = vmatprep.mubr.msk.bf16.mxu1 %vm297_vm1, %v6893_v37  ;;  %6374 = vmatprep.mubr.msk.bf16.mxu0 %vm297_vm1, %v2995_v43  ;;  %v742_v37 = vshll.u32 %v6914_v27, 16  ;;  %v732_v43 = vor.u32 %v730_v33, %v728_v26  ;;  %v750_v50 = vshll.u32 %v6916_v41, 16  ;;  %v754_v53 = vshrl.u32 %v6916_v41, 16  ;;  %v6928_v33 = vld [vmem:[%s7200_s9 + $0x60] sm:$0xff]   ;;  %v6931_v41 = vld [vmem:[%s7200_s9 + $0x68] sm:$0xff]  }
  0x46   : > { %v740_v46 = vor.u32 %v738_v35, %v736_v39  ;;  %v3022_v26 = vrot.slane %v6921_v17, 2  ;;  %v6939_v17 = vld [vmem:[%s7200_s9 + $0x88] sm:$0xff]  }
  0x47   : > { %v752_v58 = vrot.slane %v750_v50, 1  ;;  %v806_v50 = vshll.u32 %v6931_v41, 16 }
  0x49   : > { %v756_v63 = vor.u32 %v754_v53, %v752_v58 }
  0x4c   : > { %6209 = vmatmul.mubr.msk.bf16.gmra.mrb[24].mxu1 %vm297_vm1, %v6895_v45  ;;  %6375 = vmatmul.mubr.msk.bf16.vlgmr.msra.gmra.mrb[0].mxu0 %vm297_vm1, %v2997_v51  ;;  %v3011_v45 = vsel %vm2992_vm3, %v3008_v29, %v3010_v32  ;;  %v737_v51 = vsel %vm701_vm4, %v732_v43, %v736_v39  ;;  %v786_v29 = vshrl.u32 %v6924_v14, 16  ;;  %v798_v43 = vshll.u32 %v6928_v33, 16 }
  0x4d   : > { %6212 = vmatprep.mubr.msk.bf16.mxu1 %vm297_vm1, %v6897_v47  ;;  %6411 = vmatpush3.bf16.msra.mxu0 %v3596_v52  ;;  %v744_v47 = vrot.slane %v742_v37, 1  ;;  %v746_v52 = vshrl.u32 %v6914_v27, 16  ;;  %v778_v27 = vshrl.u32 %v6922_v1, 16  ;;  %v6925_v37 = vld [vmem:[%s7200_s9 + $0x90] sm:$0xff]   ;;  %v810_v1 = vshrl.u32 %v6931_v41, 16 }
  0x4e   : > { %6378 = vmatprep.mubr.msk.bf16.mxu0 %vm297_vm1, %v2999_v54  ;;  %6822 = vmatprep.subr.msk.bf16.mxu0 %vm352_vm0, %v7299_v57  ;;  %v758_v54 = vshll.u32 %v6918_v44, 16 }
  0x4f   : > { %v745_v55 = vsel %vm701_vm4, %v740_v46, %v744_v47  ;;  %v748_v60 = vor.u32 %v746_v52, %v744_v47  ;;  %v780_v35 = vor.u32 %v778_v27, %v776_v20  ;;  %v6933_v52 = vld [vmem:[%s7200_s9 + $0x70] sm:$0xff]  }
  0x50   : > { %v760_v0 = vrot.slane %v758_v54, 1  ;;  %v6936_v27 = vld [vmem:[%s7200_s9 + $0x30] sm:$0xff]  }
  0x51   : > { %v753_v5 = vsel %vm701_vm4, %v748_v60, %v752_v58  ;;  %v6929_v58 = vld [vmem:[%s7200_s9 + $0x10] sm:$0xfc]   ;;  %v6935_v60 = vld [vmem:[%s7200_s9 + $0x78] sm:$0xff]  }
  0x52   : > { %v761_v9 = vsel %vm701_vm4, %v756_v63, %v760_v0 }
  0x54   : > { %6213 = vmatmul.mubr.msk.bf16.gmra.mrb[28].mxu1 %vm297_vm1, %v6899_v59  ;;  %6379 = vmatmul.mubr.msk.bf16.gmra.mrb[4].mxu0 %vm297_vm1, %v3001_v2  ;;  %v6920_v59 = vld [vmem:[%s7200_s9 + $0x40] sm:$0xff]   ;;  %v3016_v2 = vrot.slane %v6915_v56, 2 }
  0x55   : > { %6216 = vmatprep.mubr.msk.bf16.mxu1 %vm297_vm1, %v6901_v40  ;;  %6382 = vmatprep.mubr.msk.bf16.mxu0 %vm297_vm1, %v3003_v8  ;;  %v3013_v40 = vsel %vm2992_vm3, %v3010_v32, %v3012_v48  ;;  %v766_v4 = vshll.u32 %v6920_v59, 16  ;;  %v762_v8 = vshrl.u32 %v6918_v44, 16  ;;  %v784_v32 = vrot.slane %v782_v23, 1  ;;  %v6927_v48 = vld [vmem:[%s7200_s9 + $0x98] ss:$0 sps:$4 sm:$0x33]  }
  0x56   : > { %v3019_v18 = vsel %vm2992_vm3, %v3016_v2, %v3018_v6  ;;  %v3028_v61 = vrot.slane %v6927_v48, 2  ;;  %v826_v23 = vshrl.u32 %v6935_v60, 16 }
  0x57   : > { %v768_v13 = vrot.slane %v766_v4, 1  ;;  %v764_v16 = vor.u32 %v762_v8, %v760_v0  ;;  %v788_v39 = vor.u32 %v786_v29, %v784_v32  ;;  %v785_v44 = vsel %vm701_vm4, %v780_v35, %v784_v32  ;;  %v6937_v8 = vld [vmem:[%s7200_s9 + $0x80] sm:$0xff]   ;;  %v6941_v29 = vld [vmem:[%s7200_s9 + $0x90] ss:$0 sps:$4 sm:$0x11]   ;;  %v6938_v32 = vld [vmem:[%s7200_s9 + $0x38] sm:$0xff]  }
  0x58   : > { %v3513_v41 = vrot.slane %v6938_v32, 2  ;;  %v6958_v32 = vld [vmem:[%s7200_s9 + $0x40] sm:$0xff]  }
  0x59   : > { %v769_v25 = vsel %vm701_vm4, %v764_v16, %v768_v13 }
  0x5c   : > { %6217 = vmatmul.mubr.msk.bf16.gmra.mrb[32].mxu1 %vm297_vm1, %v6903_v10  ;;  %6383 = vmatmul.mubr.msk.bf16.gmra.mrb[8].mxu0 %vm297_vm1, %v3005_v21  ;;  %v770_v10 = vshrl.u32 %v6920_v59, 16  ;;  %v6926_v21 = vld [vmem:[%s7200_s9 + $0x58] sm:$0xff]  }
  0x5d   : > { %6222 = vmatprep.mubr.msk.bf16.mxu1 %vm297_vm1, %v713_v15  ;;  %6386 = vmatprep.mubr.msk.bf16.mxu0 %vm297_vm1, %v3007_v24  ;;  %v3017_v15 = vsel %vm2992_vm3, %v3014_v49, %v3016_v2  ;;  %v3020_v24 = vrot.slane %v6919_v12, 2  ;;  %v790_v30 = vshll.u32 %v6926_v21, 16  ;;  %v794_v46 = vshrl.u32 %v6926_v21, 16 }
  0x5e   : > { %v772_v19 = vor.u32 %v770_v10, %v768_v13  ;;  %v802_v49 = vshrl.u32 %v6928_v33, 16  ;;  %v3504_v2 = vrot.slane %v6929_v58, 2  ;;  %v6934_v13 = vld [vmem:[%s7200_s9 + $0x28] sm:$0xff]   ;;  %v4241_v33 = vsel %vm352_vm0, %v7299_v57, 0 }
  0x5f   : > { %v3023_v38 = vsel %vm2992_vm3, %v3020_v24, %v3022_v26  ;;  %v792_v7 = vrot.slane %v790_v30, 1  ;;  %v3509_v21 = vrot.slane %v6934_v13, 2 }
  0x61   : > { %v793_v47 = vsel %vm701_vm4, %v788_v39, %v792_v7  ;;  %v796_v54 = vor.u32 %v794_v46, %v792_v7  ;;  %v846_v39 = vshll.u32 %v6941_v29, 16  ;;  %v3511_v7 = vrot.slane %v6936_v27, 2  ;;  %v6940_v46 = vld [vmem:[%s7200_s9 + $0x40] sm:$0xff]  }
  0x63   : > { %v3512_v48 = vsel %vm2992_vm3, %v3509_v21, %v3511_v7 }
  0x64   : > { %6223 = vmatmul.mubr.msk.bf16.vlgmr.msra.gmra.mrb[0].mxu1 %vm297_vm1, %v721_v31  ;;  %6387 = vmatmul.mubr.msk.bf16.gmra.mrb[12].mxu0 %vm297_vm1, %v3009_v42  ;;  %v6923_v31 = vld [vmem:[%s7200_s9 + $0x88] sm:$0xff]  }
  0x65   : > { %6226 = vmatprep.mubr.msk.bf16.mxu1 %vm297_vm1, %v729_v34  ;;  %6259 = vmatpush3.bf16.msra.mxu1 %v1417_v28  ;;  %v777_v28 = vsel %vm701_vm4, %v772_v19, %v776_v20  ;;  %v3021_v34 = vsel %vm2992_vm3, %v3018_v6, %v3020_v24  ;;  %v3024_v42 = vrot.slane %v6923_v31, 2  ;;  %v822_v6 = vshll.u32 %v6935_v60, 16  ;;  %v6945_v60 = vld [vmem:[%s7200_s9 + $0x50] sm:$0xff]  }
  0x66   : > { %6390 = vmatprep.mubr.msk.bf16.mxu0 %vm297_vm1, %v3011_v45  ;;  %6817 = vmatprep.subr.msk.bf16.mxu1 %vm352_vm0, %v7368_v22  ;;  %v3026_v45 = vrot.slane %v6925_v37, 2  ;;  %v3507_v19 = vrot.slane %v6932_v11, 2 }
  0x67   : > { %v3025_v53 = vsel %vm2992_vm3, %v3022_v26, %v3024_v42  ;;  %v824_v16 = vrot.slane %v822_v6, 1  ;;  %v838_v26 = vshll.u32 %v6939_v17, 16  ;;  %v6950_v6 = vld [vmem:[%s7200_s9 + $0x20] sm:$0xff]  }
  0x68   : > { %v3027_v56 = vsel %vm2992_vm3, %v3024_v42, %v3026_v45  ;;  %v3029_v10 = vsel %vm2992_vm3, %v3026_v45, %v3028_v61  ;;  %v842_v42 = vshrl.u32 %v6939_v17, 16  ;;  %v6943_v45 = vld [vmem:[%s7200_s9] sm:$0xfe]   ;;  %v1332_v13 = vrot.slane %v6950_v6, 1 }
  0x69   : > { %v828_v31 = vor.u32 %v826_v23, %v824_v16  ;;  %v840_v37 = vrot.slane %v838_v26, 1  ;;  %v6956_v23 = vld [vmem:[%s7200_s9 + $0x38] sm:$0xff]   ;;  %v6970_v6 = vld [vmem:[%s7200_s9 + $0x20] sm:$0xff]  }
  0x6a   : > { %v1338_v29 = vrot.slane %v6956_v23, 1 }
  0x6c   : > { %6227 = vmatmul.mubr.msk.bf16.gmra.mrb[4].mxu1 %vm297_vm1, %v737_v51  ;;  %6391 = vmatmul.mubr.msk.bf16.gmra.mrb[16].mxu0 %vm297_vm1, %v3013_v40  ;;  %v800_v51 = vrot.slane %v798_v43, 1  ;;  %v808_v40 = vrot.slane %v806_v50, 1  ;;  %v6944_v43 = vld [vmem:[%s7200_s9 + $0x8] sm:$0xff]   ;;  %v3514_v50 = vsel %vm2992_vm3, %v3511_v7, %v3513_v41  ;;  %v1340_v7 = vrot.slane %v6958_v32, 1 }
  0x6d   : > { %6230 = vmatprep.mubr.msk.bf16.mxu1 %vm297_vm1, %v745_v55  ;;  %6394 = vmatprep.mubr.msk.bf16.mxu0 %vm297_vm1, %v3015_v62  ;;  %v6930_v55 = vld [vmem:[%s7200_s9 + $0x18] sm:$0xff]   ;;  %v814_v62 = vshll.u32 %v6933_v52, 16 }
  0x6e   : > { %v804_v59 = vor.u32 %v802_v49, %v800_v51  ;;  %v801_v63 = vsel %vm701_vm4, %v796_v54, %v800_v51  ;;  %v3505_v0 = vrot.slane %v6930_v55, 2  ;;  %v812_v12 = vor.u32 %v810_v1, %v808_v40  ;;  %v6942_v51 = vld [vmem:[%s7200_s9 + $0x48] sm:$0xff]  }
  0x6f   : > { %v844_v49 = vor.u32 %v842_v42, %v840_v37  ;;  %v3515_v54 = vrot.slane %v6940_v46, 2  ;;  %v3517_v58 = vrot.slane %v6942_v51, 2 }
  0x70   : > { %v809_v4 = vsel %vm701_vm4, %v804_v59, %v808_v40  ;;  %v3506_v14 = vsel %vm2992_vm3, %v3504_v2, %v3505_v0  ;;  %v3508_v30 = vsel %vm2992_vm3, %v3505_v0, %v3507_v19  ;;  %v6948_v40 = vld [vmem:[%s7200_s9 + $0x18] sm:$0xff]   ;;  %v3519_v2 = vrot.slane %v6945_v60, 2 }
  0x71   : > { %v3516_v61 = vsel %vm2992_vm3, %v3513_v41, %v3515_v54  ;;  %v3518_v0 = vsel %vm2992_vm3, %v3515_v54, %v3517_v58  ;;  %v1330_v1 = vrot.slane %v6948_v40, 1  ;;  %v6959_v41 = vld [vmem:[%s7200_s9 + $0x88] sm:$0xff]   ;;  %v6963_v54 = vld [vmem:[%s7200_s9 + $0x98] sm:$0xff]  }
  0x72   : > { %v3520_v11 = vsel %vm2992_vm3, %v3517_v58, %v3519_v2  ;;  %v3533_v46 = vrot.slane %v6959_v41, 2  ;;  %v6966_v58 = vld [vmem:[%s7200_s9 + $0x60] sm:$0xff]   ;;  %v6969_v40 = vld [vmem:[%s7200_s9 + $0x68] sm:$0xff]  }
  0x74   : > { %6231 = vmatmul.mubr.msk.bf16.gmra.mrb[8].mxu1 %vm297_vm1, %v753_v5  ;;  %6395 = vmatmul.mubr.msk.bf16.gmra.mrb[20].mxu0 %vm297_vm1, %v3017_v15  ;;  %v818_v5 = vshrl.u32 %v6933_v52, 16  ;;  %v1325_v52 = vrot.slane %v6943_v45, 1  ;;  %v6962_v45 = vld [vmem:[%s7200_s9 + $0x50] sm:$0xff]  }
  0x75   : > { %6234 = vmatprep.mubr.msk.bf16.mxu1 %vm297_vm1, %v761_v9  ;;  %6398 = vmatprep.mubr.msk.bf16.mxu0 %vm297_vm1, %v3019_v18  ;;  %v816_v9 = vrot.slane %v814_v62, 1  ;;  %v830_v18 = vshll.u32 %v6937_v8, 16  ;;  %v1344_v51 = vrot.slane %v6962_v45, 1 }
  0x77   : > { %v820_v15 = vor.u32 %v818_v5, %v816_v9  ;;  %v817_v20 = vsel %vm701_vm4, %v812_v12, %v816_v9  ;;  %v6952_v9 = vld [vmem:[%s7200_s9 + $0x28] sm:$0xff]   ;;  %v6949_v12 = vld [vmem:[%s7200_s9 + $0x60] sm:$0xff]  }
  0x78   : > { %v3523_v17 = vrot.slane %v6949_v12, 2  ;;  %v6972_v12 = vld [vmem:[%s7200_s9 + $0x28] sm:$0xff]  }
  0x79   : > { %v825_v24 = vsel %vm701_vm4, %v820_v15, %v824_v16  ;;  %v6951_v15 = vld [vmem:[%s7200_s9 + $0x68] sm:$0xff]   ;;  %v1334_v16 = vrot.slane %v6952_v9, 1 }
  0x7c   : > { %6235 = vmatmul.mubr.msk.bf16.gmra.mrb[12].mxu1 %vm297_vm1, %v769_v25  ;;  %6399 = vmatmul.mubr.msk.bf16.gmra.mrb[24].mxu0 %vm297_vm1, %v3021_v34  ;;  %v834_v25 = vshrl.u32 %v6937_v8, 16  ;;  %v3510_v34 = vsel %vm2992_vm3, %v3507_v19, %v3509_v21  ;;  %v6954_v19 = vld [vmem:[%s7200_s9 + $0x30] sm:$0xff]   ;;  %v1335_v21 = vsel %vm1324_vm5, %v1332_v13, %v1334_v16 }
  0x7d   : > { %6238 = vmatprep.mubr.msk.bf16.mxu1 %vm297_vm1, %v777_v28  ;;  %6402 = vmatprep.mubr.msk.bf16.mxu0 %vm297_vm1, %v3023_v38  ;;  %v832_v28 = vrot.slane %v830_v18, 1  ;;  %v7425_v38 = vld [vmem:[%s7935_s1 + $0x20] sm:$0xf]  ;;  %v1333_v18 = vsel %vm1324_vm5, %v1330_v1, %v1332_v13  ;;  %v1336_v26 = vrot.slane %v6954_v19, 1  ;;  %v4037_v19 = vshll.u32 %v6970_v6, 16 }
  0x7f   : > { %v836_v35 = vor.u32 %v834_v25, %v832_v28  ;;  %v833_v57 = vsel %vm701_vm4, %v828_v31, %v832_v28  ;;  %v6953_v25 = vld [vmem:[%s7200_s9 + $0x70] sm:$0xff]   ;;  %v6955_v28 = vld [vmem:[%s7200_s9 + $0x78] sm:$0xff]   ;;  %v1337_v31 = vsel %vm1324_vm5, %v1334_v16, %v1336_v26 }
  0x84   : > { %6239 = vmatmul.mubr.msk.bf16.gmra.mrb[16].mxu1 %vm297_vm1, %v785_v44  ;;  %6403 = vmatmul.mubr.msk.bf16.gmra.mrb[28].mxu0 %vm297_vm1, %v3025_v53  ;;  %v841_v44 = vsel %vm701_vm4, %v836_v35, %v840_v37  ;;  %v1326_v53 = vrot.slane %v6944_v43, 1  ;;  %v6960_v35 = vld [vmem:[%s7200_s9 + $0x48] sm:$0xff]  }
  0x85   : > { %6242 = vmatprep.mubr.msk.bf16.mxu1 %vm297_vm1, %v793_v47  ;;  %6406 = vmatprep.mubr.msk.bf16.mxu0 %vm297_vm1, %v3027_v56  ;;  %v848_v47 = vrot.slane %v846_v39, 1  ;;  %v6946_v56 = vld [vmem:[%s7200_s9 + $0x10] sm:$0xff]   ;;  %v6957_v39 = vld [vmem:[%s7200_s9 + $0x80] sm:$0xff]   ;;  %v1342_v42 = vrot.slane %v6960_v35, 1 }
  0x86   : > { %v1327_v59 = vsel %vm1324_vm5, %v1325_v52, %v1326_v53  ;;  %v1328_v62 = vrot.slane %v6946_v56, 1  ;;  %v3531_v43 = vrot.slane %v6957_v39, 2  ;;  %v6968_v52 = vld [vmem:[%s7200_s9 + $0x18] sm:$0xff]   ;;  %v6967_v56 = vld [vmem:[%s7200_s9 + $0x10] sm:$0xfc]   ;;  %v6975_v39 = vld [vmem:[%s7200_s9 + $0x80] sm:$0xff]  }
  0x87   : > { %v849_v55 = vsel %vm701_vm4, %v844_v49, %v848_v47  ;;  %v1343_v47 = vsel %vm1324_vm5, %v1340_v7, %v1342_v42  ;;  %v6961_v49 = vld [vmem:[%s7200_s9 + $0x90] sm:$0xff]   ;;  %v1345_v60 = vsel %vm1324_vm5, %v1342_v42, %v1344_v51 }
  0x88   : > { %v1331_v8 = vsel %vm1324_vm5, %v1328_v62, %v1330_v1 }
  0x8c   : > { %6243 = vmatmul.mubr.msk.bf16.gmra.mrb[20].mxu1 %vm297_vm1, %v801_v63  ;;  %6407 = vmatmul.mubr.msk.bf16.gmra.mrb[32].mxu0 %vm297_vm1, %v3029_v10  ;;  %v6947_v63 = vld [vmem:[%s7200_s9 + $0x58] sm:$0xff]   ;;  %v1928_v10 = vsel %vm352_vm0, %v7368_v22, 0  ;;  %v7038_v22 = vld [vmem:[%s7935_s1 + $0x10] sm:$0xf] }
  0x8d   : > { %6246 = vmatprep.mubr.msk.bf16.mxu1 %vm297_vm1, %v809_v4  ;;  %6412 = vmatprep.mubr.msk.bf16.mxu0 %vm297_vm1, %v3506_v14  ;;  %v1329_v4 = vsel %vm1324_vm5, %v1326_v53, %v1328_v62  ;;  %v3521_v5 = vrot.slane %v6947_v63, 2  ;;  %v3534_v53 = vsel %vm2992_vm3, %v3531_v43, %v3533_v46  ;;  %v4025_v62 = vshrl.u32 %v6968_v52, 16 }
  0x8e   : > { %v4028_v63 = vshll.u32 %v6968_v52, 16 }
  0x8f   : > { %v3522_v14 = vsel %vm2992_vm3, %v3519_v2, %v3521_v5  ;;  %v4017_v2 = vshrl.u32 %v6967_v56, 16  ;;  %v4027_v9 = vrot.slane %v4025_v62, 2 }
  0x94   : > { %6247 = vmatmul.mubr.msk.bf16.gmra.mrb[24].mxu1 %vm297_vm1, %v817_v20  ;;  %6413 = vmatmul.mubr.msk.bf16.vlgmr.msra.gmra.mrb[0].mxu0 %vm297_vm1, %v3508_v30  ;;  %v3525_v20 = vrot.slane %v6951_v15, 2  ;;  %v3527_v30 = vrot.slane %v6953_v25, 2  ;;  %v4046_v25 = vshll.u32 %v6972_v12, 16 }
  0x95   : > { %6250 = vmatprep.mubr.msk.bf16.mxu1 %vm297_vm1, %v825_v24  ;;  %6449 = vmatpush3.bf16.msra.mxu0 %v4241_v33  ;;  %v3524_v24 = vsel %vm2992_vm3, %v3521_v5, %v3523_v17  ;;  %v3529_v33 = vrot.slane %v6955_v28, 2  ;;  %v1348_v5 = vrot.slane %v6966_v58, 1  ;;  %v6974_v28 = vld [vmem:[%s7200_s9 + $0x30] sm:$0xff]  }
  0x96   : > { %6416 = vmatprep.mubr.msk.bf16.mxu0 %vm297_vm1, %v3510_v34  ;;  %6823 = vmatprep.subr.msk.bf16.mxu0 %vm352_vm0, %v7425_v38  ;;  %v3526_v27 = vsel %vm2992_vm3, %v3523_v17, %v3525_v20  ;;  %v1339_v34 = vsel %vm1324_vm5, %v1336_v26, %v1338_v29  ;;  %v3528_v37 = vsel %vm2992_vm3, %v3525_v20, %v3527_v30  ;;  %v6971_v17 = vld [vmem:[%s7200_s9 + $0x70] sm:$0xff]   ;;  %v4043_v20 = vshrl.u32 %v6972_v12, 16  ;;  %v6973_v26 = vld [vmem:[%s7200_s9 + $0x78] sm:$0xff]  }
  0x97   : > { %v4048_v35 = vrot.slane %v4046_v25, 3  ;;  %v6983_v12 = vld [vmem:[%s7200_s9 + $0x50] sm:$0xff]  }
  0x98   : > { %v4045_v32 = vrot.slane %v4043_v20, 2  ;;  %v4091_v20 = vshll.u32 %v6983_v12, 16 }
  0x9a   : > { %v4049_v45 = vor.u32 %v4048_v35, %v4045_v32  ;;  %v6987_v32 = vld [vmem:[%s7200_s9 + $0x60] sm:$0xff]  }
  0x9c   : > { %6251 = vmatmul.mubr.msk.bf16.gmra.mrb[28].mxu1 %vm297_vm1, %v833_v57  ;;  %6417 = vmatmul.mubr.msk.bf16.gmra.mrb[4].mxu0 %vm297_vm1, %v3512_v48  ;;  %v3530_v57 = vsel %vm2992_vm3, %v3527_v30, %v3529_v33  ;;  %v6964_v48 = vld [vmem:[%s7200_s9 + $0x58] sm:$0xff]  }
  0x9d   : > { %6254 = vmatprep.mubr.msk.bf16.mxu1 %vm297_vm1, %v841_v44  ;;  %6420 = vmatprep.mubr.msk.bf16.mxu0 %vm297_vm1, %v3514_v50  ;;  %v1341_v44 = vsel %vm1324_vm5, %v1338_v29, %v1340_v7  ;;  %v3532_v50 = vsel %vm2992_vm3, %v3529_v33, %v3531_v43  ;;  %v6976_v33 = vld [vmem:[%s7200_s9 + $0x38] sm:$0xff]   ;;  %v4052_v7 = vshrl.u32 %v6974_v28, 16 }
  0x9e   : > { %v4061_v43 = vshrl.u32 %v6976_v33, 16 }
  0xa4   : > { %6255 = vmatmul.mubr.msk.bf16.gmra.mrb[32].mxu1 %vm297_vm1, %v849_v55  ;;  %6421 = vmatmul.mubr.msk.bf16.gmra.mrb[8].mxu0 %vm297_vm1, %v3516_v61  ;;  %v1346_v55 = vrot.slane %v6964_v48, 1  ;;  %v6965_v61 = vld [vmem:[%s7200_s9 + $0xa0] ss:$0 sps:$4 sm:$0x33]   ;;  %v4054_v48 = vrot.slane %v4052_v7, 2 }
  0xa5   : > { %6260 = vmatprep.mubr.msk.bf16.mxu1 %vm297_vm1, %v1327_v59  ;;  %6424 = vmatprep.mubr.msk.bf16.mxu0 %vm297_vm1, %v3518_v0  ;;  %v3535_v59 = vrot.slane %v6961_v49, 2  ;;  %v3537_v0 = vrot.slane %v6963_v54, 2  ;;  %v3539_v16 = vrot.slane %v6965_v61, 2 }
  0xa6   : > { %v1347_v1 = vsel %vm1324_vm5, %v1344_v51, %v1346_v55  ;;  %v6978_v51 = vld [vmem:[%s7200_s9 + $0x40] sm:$0xff]  }
  0xa7   : > { %v3538_v13 = vsel %vm2992_vm3, %v3535_v59, %v3537_v0  ;;  %v3540_v29 = vsel %vm2992_vm3, %v3537_v0, %v3539_v16  ;;  %v4070_v62 = vshrl.u32 %v6978_v51, 16  ;;  %v6979_v0 = vld [vmem:[%s7200_s9 + $0x90] ss:$0 sps:$4 sm:$0x11]  }
  0xac   : > { %6261 = vmatmul.mubr.msk.bf16.vlgmr.msra.gmra.mrb[0].mxu1 %vm297_vm1, %v1329_v4  ;;  %6425 = vmatmul.mubr.msk.bf16.gmra.mrb[12].mxu0 %vm297_vm1, %v3520_v11  ;;  %v4020_v4 = vshll.u32 %v6967_v56, 16  ;;  %v1350_v11 = vrot.slane %v6969_v40, 1 }
  0xad   : > { %6264 = vmatprep.mubr.msk.bf16.mxu1 %vm297_vm1, %v1331_v8  ;;  %6297 = vmatpush3.bf16.msra.mxu1 %v1928_v10  ;;  %v3536_v8 = vsel %vm2992_vm3, %v3533_v46, %v3535_v59  ;;  %v4030_v10 = vrot.slane %v4028_v63, 3  ;;  %v6980_v59 = vld [vmem:[%s7200_s9 + $0x48] sm:$0xff]   ;;  %v4073_v63 = vshll.u32 %v6978_v51, 16 }
  0xae   : > { %6819 = vmatprep.subr.msk.bf16.mxu1 %vm352_vm0, %v7038_v22  ;;  %6428 = vmatprep.mubr.msk.bf16.mxu0 %vm297_vm1, %v3522_v14  ;;  %v4019_v14 = vrot.slane %v4017_v2, 2  ;;  %v4022_v15 = vrot.slane %v4020_v4, 3  ;;  %v4034_v22 = vshrl.u32 %v6970_v6, 16  ;;  %v4082_v2 = vshll.u32 %v6980_v59, 16  ;;  %v6981_v4 = vld [vmem:[%s7200_s9 + $0x8] sm:$0xfe]  }
  0xaf   : > { %v4031_v23 = vor.u32 %v4030_v10, %v4027_v9  ;;  %v4072_v9 = vrot.slane %v4070_v62, 2  ;;  %v4075_v10 = vrot.slane %v4073_v63, 3  ;;  %v6992_v63 = vld [vmem:[%s7200_s9 + $0x38] sm:$0xff]  }
  0xb0   : > { %v4036_v30 = vrot.slane %v4034_v22, 2  ;;  %v6985_v22 = vld [vmem:[%s7200_s9 + $0x58] sm:$0xff]  }
  0xb1   : > { %v4097_v25 = vshrl.u32 %v6985_v22, 16 }
  0xb4   : > { %6265 = vmatmul.mubr.msk.bf16.gmra.mrb[4].mxu1 %vm297_vm1, %v1333_v18  ;;  %6429 = vmatmul.mubr.msk.bf16.gmra.mrb[16].mxu0 %vm297_vm1, %v3524_v24  ;;  %v1349_v18 = vsel %vm1324_vm5, %v1346_v55, %v1348_v5  ;;  %v1351_v24 = vsel %vm1324_vm5, %v1348_v5, %v1350_v11  ;;  %v4753_v55 = vsel %vm352_vm0, %v7425_v38, 0  ;;  %v6982_v5 = vld [vmem:[%s7200_s9 + $0x10] sm:$0xff]  }
  0xb5   : > { %6268 = vmatprep.mubr.msk.bf16.mxu1 %vm297_vm1, %v1335_v21  ;;  %6432 = vmatprep.mubr.msk.bf16.mxu0 %vm297_vm1, %v3526_v27  ;;  %v4023_v21 = vor.u32 %v4022_v15, %v4019_v14  ;;  %v1352_v27 = vrot.slane %v6971_v17, 1  ;;  %v4084_v14 = vrot.slane %v4082_v2, 3  ;;  %v1836_v15 = vrot.slane %v6981_v4, 1  ;;  %v6994_v2 = vld [vmem:[%s7200_s9 + $0x40] sm:$0xff]  }
  0xb6   : > { %v1837_v16 = vrot.slane %v6982_v5, 1  ;;  %v4076_v17 = vor.u32 %v4075_v10, %v4072_v9  ;;  %v6995_v9 = vld [vmem:[%s7200_s9 + $0x80] sm:$0xff]  }
  0xb7   : > { %v1353_v42 = vsel %vm1324_vm5, %v1350_v11, %v1352_v27  ;;  %v1360_v11 = vrot.slane %v6979_v0, 1 }
  0xbc   : > { %6269 = vmatmul.mubr.msk.bf16.gmra.mrb[8].mxu1 %vm297_vm1, %v1337_v31  ;;  %6433 = vmatmul.mubr.msk.bf16.gmra.mrb[20].mxu0 %vm297_vm1, %v3528_v37  ;;  %v4039_v31 = vrot.slane %v4037_v19, 3  ;;  %v1354_v37 = vrot.slane %v6973_v26, 1  ;;  %v4088_v19 = vshrl.u32 %v6983_v12, 16  ;;  %v4100_v26 = vshll.u32 %v6985_v22, 16 }
  0xbd   : > { %6272 = vmatprep.mubr.msk.bf16.mxu1 %vm297_vm1, %v1339_v34  ;;  %6436 = vmatprep.mubr.msk.bf16.mxu0 %vm297_vm1, %v3530_v57  ;;  %v4032_v34 = vsel %vm4015_vm6, %v4023_v21, %v4031_v23  ;;  %v4055_v57 = vshll.u32 %v6974_v28, 16  ;;  %v6984_v21 = vld [vmem:[%s7200_s9 + $0x18] sm:$0xff]   ;;  %v4142_v22 = vshrl.u32 %v6995_v9, 16 }
  0xbe   : > { %v4040_v41 = vor.u32 %v4039_v31, %v4036_v30  ;;  %v1355_v46 = vsel %vm1324_vm5, %v1352_v27, %v1354_v37  ;;  %v6986_v27 = vld [vmem:[%s7200_s9 + $0x20] sm:$0xff]   ;;  %v4093_v30 = vrot.slane %v4091_v20, 3  ;;  %v1839_v31 = vrot.slane %v6984_v21, 1 }
  0xbf   : > { %v4057_v49 = vrot.slane %v4055_v57, 3  ;;  %v4102_v35 = vrot.slane %v4100_v26, 3  ;;  %v4144_v26 = vrot.slane %v4142_v22, 2 }
  0xc0   : > { %v4041_v52 = vsel %vm4015_vm6, %v4031_v23, %v4040_v41  ;;  %v4050_v56 = vsel %vm4015_vm6, %v4040_v41, %v4049_v45  ;;  %v1840_v57 = vsel %vm1324_vm5, %v1837_v16, %v1839_v31  ;;  %v4106_v41 = vshrl.u32 %v6987_v32, 16 }
  0xc1   : > { %v4058_v40 = vor.u32 %v4057_v49, %v4054_v48  ;;  %v6990_v48 = vld [vmem:[%s7200_s9 + $0x30] sm:$0xff]  }
  0xc3   : > { %v4059_v6 = vsel %vm4015_vm6, %v4049_v45, %v4058_v40 }
  0xc4   : > { %6273 = vmatmul.mubr.msk.bf16.gmra.mrb[12].mxu1 %vm297_vm1, %v1341_v44  ;;  %6437 = vmatmul.mubr.msk.bf16.gmra.mrb[24].mxu0 %vm297_vm1, %v3532_v50  ;;  %v4064_v44 = vshll.u32 %v6976_v33, 16  ;;  %v1356_v50 = vrot.slane %v6975_v39, 1  ;;  %v6989_v39 = vld [vmem:[%s7200_s9 + $0x68] sm:$0xff]  }
  0xc5   : > { %6276 = vmatprep.mubr.msk.bf16.mxu1 %vm297_vm1, %v1343_v47  ;;  %6440 = vmatprep.mubr.msk.bf16.mxu0 %vm297_vm1, %v3534_v53  ;;  %v6977_v47 = vld [vmem:[%s7200_s9 + $0x88] sm:$0xff]   ;;  %v4063_v53 = vrot.slane %v4061_v43, 2 }
  0xc6   : > { %v4066_v54 = vrot.slane %v4064_v44, 3  ;;  %v1358_v58 = vrot.slane %v6977_v47, 1  ;;  %v6988_v43 = vld [vmem:[%s7200_s9 + $0x28] sm:$0xff]   ;;  %v4118_v47 = vshll.u32 %v6989_v39, 16 }
  0xc8   : > { %v4067_v61 = vor.u32 %v4066_v54, %v4063_v53  ;;  %v1359_v38 = vsel %vm1324_vm5, %v1356_v50, %v1358_v58  ;;  %v6991_v53 = vld [vmem:[%s7200_s9 + $0x70] sm:$0xff]  }
  0xc9   : > { %v4127_v62 = vshll.u32 %v6991_v53, 16 }
  0xca   : > { %v4077_v28 = vsel %vm4015_vm6, %v4067_v61, %v4076_v17 }
  0xcc   : > { %6277 = vmatmul.mubr.msk.bf16.gmra.mrb[16].mxu1 %vm297_vm1, %v1345_v60  ;;  %6441 = vmatmul.mubr.msk.bf16.gmra.mrb[28].mxu0 %vm297_vm1, %v3536_v8  ;;  %v1357_v60 = vsel %vm1324_vm5, %v1354_v37, %v1356_v50  ;;  %v4068_v8 = vsel %vm4015_vm6, %v4058_v40, %v4067_v61  ;;  %v1841_v37 = vrot.slane %v6986_v27, 1  ;;  %v4108_v50 = vrot.slane %v4106_v41, 2 }
  0xcd   : > { %6280 = vmatprep.mubr.msk.bf16.mxu1 %vm297_vm1, %v1347_v1  ;;  %6444 = vmatprep.mubr.msk.bf16.mxu0 %vm297_vm1, %v3538_v13  ;;  %v4079_v1 = vshrl.u32 %v6980_v59, 16  ;;  %v6993_v59 = vld [vmem:[%s7200_s9 + $0x78] sm:$0xff]   ;;  %v4124_v61 = vshrl.u32 %v6991_v53, 16 }
  0xce   : > { %v1842_v45 = vsel %vm1324_vm5, %v1839_v31, %v1841_v37 }
  0xcf   : > { %v4081_v13 = vrot.slane %v4079_v1, 2  ;;  %v4136_v1 = vshll.u32 %v6993_v59, 16  ;;  %v4126_v5 = vrot.slane %v4124_v61, 2 }
  0xd1   : > { %v4085_v23 = vor.u32 %v4084_v14, %v4081_v13  ;;  %v4138_v12 = vrot.slane %v4136_v1, 3  ;;  %v1849_v13 = vrot.slane %v6994_v2, 1  ;;  %v6997_v14 = vld [vmem:[%s7200_s9 + $0x88] sm:$0xff]   ;;  %v7005_v2 = vld [vmem:[%s7200_s9 + $0x10] sm:$0xf8]  }
  0xd2   : > { %v4151_v21 = vshrl.u32 %v6997_v14, 16 }
  0xd3   : > { %v4086_v33 = vsel %vm4015_vm6, %v4076_v17, %v4085_v23  ;;  %v4145_v17 = vshll.u32 %v6995_v9, 16  ;;  %v7009_v9 = vld [vmem:[%s7200_s9 + $0x78] sm:$0xff]  }
  0xd4   : > { %6281 = vmatmul.mubr.msk.bf16.gmra.mrb[20].mxu1 %vm297_vm1, %v1349_v18  ;;  %6445 = vmatmul.mubr.msk.bf16.gmra.mrb[32].mxu0 %vm297_vm1, %v3540_v29  ;;  %v1361_v18 = vsel %vm1324_vm5, %v1358_v58, %v1360_v11  ;;  %v4090_v29 = vrot.slane %v4088_v19, 2  ;;  %v1845_v58 = vrot.slane %v6990_v48, 1  ;;  %v4153_v31 = vrot.slane %v4151_v21, 2  ;;  %v7013_v21 = vld [vmem:[%s7200_s9 + $0x88] sm:$0xff]  }
  0xd5   : > { %6284 = vmatprep.mubr.msk.bf16.mxu1 %vm297_vm1, %v1351_v24  ;;  %6450 = vmatprep.mubr.msk.bf16.mxu0 %vm297_vm1, %v4032_v34  ;;  %v1838_v24 = vsel %vm1324_vm5, %v1836_v15, %v1837_v16  ;;  %v4099_v34 = vrot.slane %v4097_v25, 2  ;;  %v4147_v27 = vrot.slane %v4145_v17, 3  ;;  %v7010_v17 = vld [vmem:[%s7200_s9 + $0x28] sm:$0xff]  }
  0xd6   : > { %v4094_v7 = vor.u32 %v4093_v30, %v4090_v29  ;;  %v6999_v29 = vld [vmem:[%s7200_s9 + $0x90] sm:$0xff]  }
  0xd7   : > { %v4103_v44 = vor.u32 %v4102_v35, %v4099_v34  ;;  %v7001_v34 = vld [vmem:[%s7200_s9 + $0x98] sm:$0xff]   ;;  %v4148_v35 = vor.u32 %v4147_v27, %v4144_v26  ;;  %v7019_v26 = vld [vmem:[%s7200_s9 + $0x60] sm:$0xff]  }
  0xd8   : > { %v4095_v49 = vsel %vm4015_vm6, %v4085_v23, %v4094_v7  ;;  %v4154_v23 = vshll.u32 %v6997_v14, 16 }
  0xd9   : > { %v4104_v54 = vsel %vm4015_vm6, %v4094_v7, %v4103_v44  ;;  %v4163_v7 = vshll.u32 %v6999_v29, 16 }
  0xdb   : > { %v4165_v48 = vrot.slane %v4163_v7, 3  ;;  %v7021_v7 = vld [vmem:[%s7200_s9 + $0x68] sm:$0xff]  }
  0xdc   : > { %6285 = vmatmul.mubr.msk.bf16.gmra.mrb[24].mxu1 %vm297_vm1, %v1353_v42  ;;  %6451 = vmatmul.mubr.msk.bf16.vlgmr.msra.gmra.mrb[0].mxu0 %vm297_vm1, %v4041_v52  ;;  %v4109_v42 = vshll.u32 %v6987_v32, 16  ;;  %v1843_v52 = vrot.slane %v6988_v43, 1  ;;  %v4156_v32 = vrot.slane %v4154_v23, 3  ;;  %v4169_v43 = vshrl.u32 %v7001_v34, 16 }
  0xdd   : > { %6288 = vmatprep.mubr.msk.bf16.mxu1 %vm297_vm1, %v1355_v46  ;;  %6487 = vmatpush3.bf16.msra.mxu0 %v4753_v55  ;;  %v4115_v46 = vshrl.u32 %v6989_v39, 16  ;;  %v4160_v39 = vshrl.u32 %v6999_v29, 16  ;;  %v4666_v23 = vrot.slane %v7010_v17, 3  ;;  %v1867_v29 = vrot.slane %v7013_v21, 1 }
  0xde   : > { %6454 = vmatprep.mubr.msk.bf16.mxu0 %vm297_vm1, %v4050_v56  ;;  %v4111_v51 = vrot.slane %v4109_v42, 3  ;;  %v4120_v56 = vrot.slane %v4118_v47, 3  ;;  %v1846_v0 = vsel %vm1324_vm5, %v1843_v52, %v1845_v58  ;;  %v4157_v41 = vor.u32 %v4156_v32, %v4153_v31  ;;  %v7014_v31 = vld [vmem:[%s7200_s9 + $0x38] sm:$0xff]  }
  0xdf   : > { %v4117_v55 = vrot.slane %v4115_v46, 2  ;;  %v4162_v47 = vrot.slane %v4160_v39, 2  ;;  %v7017_v39 = vld [vmem:[%s7200_s9 + $0x98] ss:$0 sps:$4 sm:$0x11]  }
  0xe0   : > { %v4112_v40 = vor.u32 %v4111_v51, %v4108_v50  ;;  %v7003_v50 = vld [vmem:[%s7200_s9 + $0xa0] ss:$0 sps:$4 sm:$0x77]   ;;  %v4158_v51 = vsel %vm4015_vm6, %v4148_v35, %v4157_v41 }
  0xe2   : > { %v4113_v4 = vsel %vm4015_vm6, %v4103_v44, %v4112_v40  ;;  %v4172_v44 = vshll.u32 %v7001_v34, 16  ;;  %v2450_v34 = vshll.u32 %v7019_v26, 16 }
  0xe4   : > { %6289 = vmatmul.mubr.msk.bf16.gmra.mrb[28].mxu1 %vm297_vm1, %v1357_v60  ;;  %6455 = vmatmul.mubr.msk.bf16.gmra.mrb[4].mxu0 %vm297_vm1, %v4059_v6  ;;  %v1844_v60 = vsel %vm1324_vm5, %v1841_v37, %v1843_v52  ;;  %v4129_v6 = vrot.slane %v4127_v62, 3  ;;  %v4171_v52 = vrot.slane %v4169_v43, 2  ;;  %v4174_v53 = vrot.slane %v4172_v44, 3  ;;  %v7007_v62 = vld [vmem:[%s7200_s9 + $0x70] sm:$0xff]  }
  0xe5   : > { %6292 = vmatprep.mubr.msk.bf16.mxu1 %vm297_vm1, %v1359_v38  ;;  %6458 = vmatprep.mubr.msk.bf16.mxu0 %vm297_vm1, %v4068_v8  ;;  %v4133_v38 = vshrl.u32 %v6993_v59, 16  ;;  %v1847_v8 = vrot.slane %v6992_v63, 1  ;;  %v4181_v59 = vshll.u32 %v7003_v50, 16  ;;  %v2452_v43 = vrot.slane %v2450_v34, 2  ;;  %v7023_v44 = vld [vmem:[%s7200_s9 + $0x70] sm:$0xff]  }
  0xe6   : > { %v4130_v15 = vor.u32 %v4129_v6, %v4126_v5  ;;  %v1861_v5 = vrot.slane %v7007_v62, 1  ;;  %v7033_v34 = vld [vmem:[%s7200_s9 + $0x98] ss:$0 sps:$4 sm:$0x33]  }
  0xe7   : > { %v4135_v11 = vrot.slane %v4133_v38, 2  ;;  %v1848_v16 = vsel %vm1324_vm5, %v1845_v58, %v1847_v8  ;;  %v1850_v20 = vsel %vm1324_vm5, %v1847_v8, %v1849_v13  ;;  %v4178_v58 = vshrl.u32 %v7003_v50, 16 }
  0xe9   : > { %v4139_v19 = vor.u32 %v4138_v12, %v4135_v11 }
  0xeb   : > { %v4140_v30 = vsel %vm4015_vm6, %v4130_v15, %v4139_v19  ;;  %v4149_v46 = vsel %vm4015_vm6, %v4139_v19, %v4148_v35 }
  0xec   : > { %6293 = vmatmul.mubr.msk.bf16.gmra.mrb[32].mxu1 %vm297_vm1, %v1361_v18  ;;  %6459 = vmatmul.mubr.msk.bf16.gmra.mrb[8].mxu0 %vm297_vm1, %v4077_v28  ;;  %v6996_v18 = vld [vmem:[%s7200_s9 + $0x48] sm:$0xff]  }
  0xed   : > { %6298 = vmatprep.mubr.msk.bf16.mxu1 %vm297_vm1, %v1838_v24  ;;  %6462 = vmatprep.mubr.msk.bf16.mxu0 %vm297_vm1, %v4086_v33  ;;  %v6998_v24 = vld [vmem:[%s7200_s9 + $0x50] sm:$0xff]   ;;  %v1851_v28 = vrot.slane %v6996_v18, 1 }
  0xee   : > { %v1853_v33 = vrot.slane %v6998_v24, 1 }
  0xef   : > { %v1852_v37 = vsel %vm1324_vm5, %v1849_v13, %v1851_v28  ;;  %v7011_v13 = vld [vmem:[%s7200_s9 + $0x80] sm:$0xff]  }
  0xf0   : > { %v1854_v42 = vsel %vm1324_vm5, %v1851_v28, %v1853_v33  ;;  %v1865_v18 = vrot.slane %v7011_v13, 1  ;;  %v7012_v28 = vld [vmem:[%s7200_s9 + $0x30] sm:$0xff]  }
  0xf1   : > { %v4668_v35 = vrot.slane %v7012_v28, 3 }
  0xf4   : > { %6299 = vmatmul.mubr.msk.bf16.vlgmr.msra.gmra.mrb[0].mxu1 %vm297_vm1, %v1840_v57  ;;  %6463 = vmatmul.mubr.msk.bf16.gmra.mrb[12].mxu0 %vm297_vm1, %v4095_v49  ;;  %v7000_v57 = vld [vmem:[%s7200_s9 + $0x58] sm:$0xff]  }
  0xf5   : > { %6302 = vmatprep.mubr.msk.bf16.mxu1 %vm297_vm1, %v1842_v45  ;;  %6525 = vmatpush3.bf16.msra.mxu1 %v7186_v3  ;;  %v4121_v3 = vor.u32 %v4120_v56, %v4117_v55  ;;  %v7002_v45 = vld [vmem:[%s7200_s9 + $0x60] sm:$0xff]   ;;  %v1855_v49 = vrot.slane %v7000_v57, 1  ;;  %v4166_v55 = vor.u32 %v4165_v48, %v4162_v47  ;;  %v4670_v57 = vrot.slane %v7014_v31, 3 }
  0xf6   : > { %6466 = vmatprep.mubr.msk.bf16.mxu0 %vm297_vm1, %v4104_v54  ;;  %v1857_v54 = vrot.slane %v7002_v45, 1  ;;  %v4669_v45 = vsel %vm4660_vm7, %v4666_v23, %v4668_v35  ;;  %v1871_v47 = vrot.slane %v7017_v39, 1  ;;  %v2456_v48 = vshrl.u32 %v7021_v7, 16 }
  0xf7   : > { %v4122_v10 = vsel %vm4015_vm6, %v4112_v40, %v4121_v3  ;;  %v4131_v25 = vsel %vm4015_vm6, %v4121_v3, %v4130_v15  ;;  %v1856_v56 = vsel %vm1324_vm5, %v1853_v33, %v1855_v49  ;;  %v7004_v40 = vld [vmem:[%s7200_s9 + $0x68] sm:$0xff]   ;;  %v4167_v63 = vsel %vm4015_vm6, %v4157_v41, %v4166_v55  ;;  %v7008_v15 = vld [vmem:[%s7200_s9 + $0x20] sm:$0xff]  }
  0xf8   : > { %v1858_v61 = vsel %vm1324_vm5, %v1855_v49, %v1857_v54  ;;  %v4180_v3 = vrot.slane %v4178_v58, 2  ;;  %v1859_v38 = vrot.slane %v7004_v40, 1  ;;  %v4664_v19 = vrot.slane %v7008_v15, 3  ;;  %v7025_v40 = vld [vmem:[%s7200_s9 + $0x78] sm:$0xff]  }
  0xf9   : > { %v2447_v33 = vshrl.u32 %v7019_v26, 16  ;;  %v2459_v49 = vshll.u32 %v7021_v7, 16  ;;  %v4671_v50 = vsel %vm4660_vm7, %v4668_v35, %v4670_v57  ;;  %v2458_v58 = vrot.slane %v2456_v48, 1  ;;  %v7026_v26 = vld [vmem:[%s7200_s9 + $0x68] sm:$0xff]  }
  0xfa   : > { %v1860_v8 = vsel %vm1324_vm5, %v1857_v54, %v1859_v38  ;;  %v1862_v12 = vsel %vm1324_vm5, %v1859_v38, %v1861_v5  ;;  %v2468_v54 = vshll.u32 %v7023_v44, 16  ;;  %v7020_v38 = vld [vmem:[%s7200_s9 + $0x50] sm:$0xff]   ;;  %v4682_v35 = vrot.slane %v7026_v26, 3 }
  0xfc   : > { %6303 = vmatmul.mubr.msk.bf16.gmra.mrb[4].mxu1 %vm297_vm1, %v1844_v60  ;;  %6467 = vmatmul.mubr.msk.bf16.gmra.mrb[16].mxu0 %vm297_vm1, %v4113_v4  ;;  %v4175_v60 = vor.u32 %v4174_v53, %v4171_v52  ;;  %v7006_v4 = vld [vmem:[%s7200_s9 + $0x18] sm:$0xff]   ;;  %v2465_v53 = vshrl.u32 %v7023_v44, 16  ;;  %v2513_v44 = vshll.u32 %v7033_v34, 16 }
  0xfd   : > { %6306 = vmatprep.mubr.msk.bf16.mxu1 %vm297_vm1, %v1846_v0  ;;  %6470 = vmatprep.mubr.msk.bf16.mxu0 %vm297_vm1, %v4122_v10  ;;  %v4183_v0 = vrot.slane %v4181_v59, 3  ;;  %v4661_v10 = vrot.slane %v7005_v2, 3  ;;  %v4662_v11 = vrot.slane %v7006_v4, 3  ;;  %v2461_v59 = vrot.slane %v2459_v49, 2 }
  0xfe   : > { %v4176_v1 = vsel %vm4015_vm6, %v4166_v55, %v4175_v60  ;;  %v2467_v62 = vrot.slane %v2465_v53, 1  ;;  %v2474_v2 = vshrl.u32 %v7025_v40, 16  ;;  %v2477_v4 = vshll.u32 %v7025_v40, 16 }
  0xff   : > { %v4184_v6 = vor.u32 %v4183_v0, %v4180_v3  ;;  %v4663_v22 = vsel %vm4660_vm7, %v4661_v10, %v4662_v11  ;;  %v4665_v27 = vsel %vm4660_vm7, %v4662_v11, %v4664_v19  ;;  %v7027_v3 = vld [vmem:[%s7200_s9 + $0x80] sm:$0xff]   ;;  %v4676_v10 = vrot.slane %v7020_v38, 3 }
 0x100   : > { %v2479_v13 = vrot.slane %v2477_v4, 2  ;;  %v7037_v4 = vld [vmem:[%s7200_s9 + $0xa0] ss:$0 sps:$4 sm:$0x77]  }
 0x101   : > { %v4185_v14 = vsel %vm4015_vm6, %v4175_v60, %v4184_v6  ;;  %v7022_v6 = vld [vmem:[%s7200_s9 + $0x58] sm:$0xff]  }
 0x102   : > { %v4678_v15 = vrot.slane %v7022_v6, 3  ;;  %v4696_v6 = vrot.slane %v7037_v4, 3 }
 0x104   : > { %6307 = vmatmul.mubr.msk.bf16.gmra.mrb[8].mxu1 %vm297_vm1, %v1848_v16  ;;  %6471 = vmatmul.mubr.msk.bf16.gmra.mrb[20].mxu0 %vm297_vm1, %v4131_v25  ;;  %v1863_v16 = vrot.slane %v7009_v9, 1  ;;  %v7015_v25 = vld [vmem:[%s7200_s9 + $0x90] sm:$0xff]   ;;  %v2486_v9 = vshll.u32 %v7027_v3, 16 }
 0x105   : > { %6310 = vmatprep.mubr.msk.bf16.mxu1 %vm297_vm1, %v1850_v20  ;;  %6474 = vmatprep.mubr.msk.bf16.mxu0 %vm297_vm1, %v4140_v30  ;;  %v4667_v30 = vsel %vm4660_vm7, %v4664_v19, %v4666_v23  ;;  %v1869_v32 = vrot.slane %v7015_v25, 1  ;;  %v4679_v25 = vsel %vm4660_vm7, %v4676_v10, %v4678_v15 }
 0x106   : > { %v1864_v20 = vsel %vm1324_vm5, %v1861_v5, %v1863_v16  ;;  %v1866_v24 = vsel %vm1324_vm5, %v1863_v16, %v1865_v18  ;;  %v2488_v17 = vrot.slane %v2486_v9, 2 }
 0x107   : > { %v1870_v41 = vsel %vm1324_vm5, %v1867_v29, %v1869_v32 }
 0x10c   : > { %6311 = vmatmul.mubr.msk.bf16.gmra.mrb[12].mxu1 %vm297_vm1, %v1852_v37  ;;  %6475 = vmatmul.mubr.msk.bf16.gmra.mrb[24].mxu0 %vm297_vm1, %v4149_v46  ;;  %v1868_v37 = vsel %vm1324_vm5, %v1865_v18, %v1867_v29  ;;  %v7016_v46 = vld [vmem:[%s7200_s9 + $0x40] sm:$0xff]   ;;  %v7031_v18 = vld [vmem:[%s7200_s9 + $0x90] sm:$0xff]  }
 0x10d   : > { %6314 = vmatprep.mubr.msk.bf16.mxu1 %vm297_vm1, %v1854_v42  ;;  %6478 = vmatprep.mubr.msk.bf16.mxu0 %vm297_vm1, %v4158_v51  ;;  %v2449_v42 = vrot.slane %v2447_v33, 1  ;;  %v7018_v51 = vld [vmem:[%s7200_s9 + $0x48] sm:$0xff]   ;;  %v4672_v55 = vrot.slane %v7016_v46, 3  ;;  %v2501_v28 = vshrl.u32 %v7031_v18, 16  ;;  %v2504_v29 = vshll.u32 %v7031_v18, 16  ;;  %v7030_v46 = vld [vmem:[%s7200_s9 + $0x78] sm:$0xff]  }
 0x10e   : > { %v4674_v60 = vrot.slane %v7018_v51, 3  ;;  %v2515_v51 = vrot.slane %v2513_v44, 2 }
 0x10f   : > { %v2453_v52 = vor.u32 %v2452_v43, %v2449_v42  ;;  %v4673_v0 = vsel %vm4660_vm7, %v4670_v57, %v4672_v55  ;;  %v2503_v39 = vrot.slane %v2501_v28, 1  ;;  %v2506_v7 = vrot.slane %v2504_v29, 2  ;;  %v7761_v29 = vld [vmem:[%s7936_s2] ss:$0 sm:$0xff] }
 0x110   : > { %v4675_v5 = vsel %vm4660_vm7, %v4672_v55, %v4674_v60  ;;  %v4677_v19 = vsel %vm4660_vm7, %v4674_v60, %v4676_v10  ;;  %v2510_v43 = vshrl.u32 %v7033_v34, 16  ;;  %v7032_v55 = vld [vmem:[%s7200_s9 + $0x80] sm:$0xff]  }
 0x111   : > { %v4688_v40 = vrot.slane %v7032_v55, 3 }
 0x114   : > { %6315 = vmatmul.mubr.msk.bf16.gmra.mrb[16].mxu1 %vm297_vm1, %v1856_v56  ;;  %6479 = vmatmul.mubr.msk.bf16.gmra.mrb[28].mxu0 %vm297_vm1, %v4167_v63  ;;  %v1872_v56 = vsel %vm1324_vm5, %v1869_v32, %v1871_v47  ;;  %v2470_v63 = vrot.slane %v2468_v54, 2  ;;  %v2507_v47 = vor.u32 %v2506_v7, %v2503_v39 }
 0x115   : > { %6318 = vmatprep.mubr.msk.bf16.mxu1 %vm297_vm1, %v1858_v61  ;;  %6482 = vmatprep.mubr.msk.bf16.mxu0 %vm297_vm1, %v4176_v1  ;;  %v2454_v61 = vsel %vm2347_vm2, %v7272_v36, %v2453_v52  ;;  %v2462_v1 = vor.u32 %v2461_v59, %v2458_v58  ;;  %v2483_v36 = vshrl.u32 %v7027_v3, 16  ;;  %v7034_v59 = vld [vmem:[%s7200_s9 + $0x88] sm:$0xff]  }
 0x117   : > { %v2463_v11 = vsel %vm2347_vm2, %v2453_v52, %v2462_v1  ;;  %v4686_v52 = vrot.slane %v7030_v46, 3 }
 0x11c   : > { %6319 = vmatmul.mubr.msk.bf16.gmra.mrb[20].mxu1 %vm297_vm1, %v1860_v8  ;;  %6483 = vmatmul.mubr.msk.bf16.gmra.mrb[32].mxu0 %vm297_vm1, %v4185_v14  ;;  %v2471_v8 = vor.u32 %v2470_v63, %v2467_v62  ;;  %v7029_v14 = vld [vmem:[%s7200_s9 + $0x88] sm:$0xff]   ;;  %v4689_v62 = vsel %vm4660_vm7, %v4686_v52, %v4688_v40  ;;  %v7035_v63 = vld [vmem:[%s7200_s9 + $0x90] sm:$0xff]  }
 0x11d   : > { %6322 = vmatprep.mubr.msk.bf16.mxu1 %vm297_vm1, %v1862_v12  ;;  %6488 = vmatprep.mubr.msk.bf16.mxu0 %vm297_vm1, %v4663_v22  ;;  %v2476_v12 = vrot.slane %v2474_v2, 1  ;;  %v2485_v22 = vrot.slane %v2483_v36, 1  ;;  %v2492_v23 = vshrl.u32 %v7029_v14, 16  ;;  %v4692_v38 = vrot.slane %v7035_v63, 3 }
 0x11e   : > { %v2472_v16 = vsel %vm2347_vm2, %v2462_v1, %v2471_v8 }
 0x11f   : > { %v2480_v21 = vor.u32 %v2479_v13, %v2476_v12  ;;  %v2494_v32 = vrot.slane %v2492_v23, 1 }
 0x121   : > { %v2481_v31 = vsel %vm2347_vm2, %v2471_v8, %v2480_v21 }
 0x124   : > { %6323 = vmatmul.mubr.msk.bf16.gmra.mrb[24].mxu1 %vm297_vm1, %v1864_v20  ;;  %6489 = vmatmul.mubr.msk.bf16.vlgmr.msra.gmra.mrb[0].mxu0 %vm297_vm1, %v4665_v27  ;;  %v7024_v20 = vld [vmem:[%s7200_s9 + $0x60] sm:$0xff]   ;;  %v2489_v27 = vor.u32 %v2488_v17, %v2485_v22 }
 0x125   : > { %6326 = vmatprep.mubr.msk.bf16.mxu1 %vm297_vm1, %v1866_v24  ;;  %6492 = vmatprep.mubr.msk.bf16.mxu0 %vm297_vm1, %v4667_v30  ;;  %v2495_v24 = vshll.u32 %v7029_v14, 16  ;;  %v4680_v30 = vrot.slane %v7024_v20, 3 }
 0x127   : > { %v2497_v33 = vrot.slane %v2495_v24, 2  ;;  %v4681_v57 = vsel %vm4660_vm7, %v4678_v15, %v4680_v30 }
 0x129   : > { %v2498_v42 = vor.u32 %v2497_v33, %v2494_v32 }
 0x12b   : > { %v2499_v49 = vsel %vm2347_vm2, %v2489_v27, %v2498_v42  ;;  %v2508_v53 = vsel %vm2347_vm2, %v2498_v42, %v2507_v47 }
 0x12c   : > { %6327 = vmatmul.mubr.msk.bf16.gmra.mrb[28].mxu1 %vm297_vm1, %v1868_v37  ;;  %6493 = vmatmul.mubr.msk.bf16.gmra.mrb[4].mxu0 %vm297_vm1, %v4669_v45  ;;  %v2490_v37 = vsel %vm2347_vm2, %v2480_v21, %v2489_v27  ;;  %v4683_v45 = vsel %vm4660_vm7, %v4680_v30, %v4682_v35 }
 0x12d   : > { %6330 = vmatprep.mubr.msk.bf16.mxu1 %vm297_vm1, %v1870_v41  ;;  %6496 = vmatprep.mubr.msk.bf16.mxu0 %vm297_vm1, %v4671_v50  ;;  %v7028_v41 = vld [vmem:[%s7200_s9 + $0x70] sm:$0xff]   ;;  %v2512_v50 = vrot.slane %v2510_v43, 1 }
 0x12e   : > { %v4684_v48 = vrot.slane %v7028_v41, 3 }
 0x130   : > { %v4685_v54 = vsel %vm4660_vm7, %v4682_v35, %v4684_v48  ;;  %v4687_v58 = vsel %vm4660_vm7, %v4684_v48, %v4686_v52 }
 0x134   : > { %6331 = vmatmul.mubr.msk.bf16.gmra.mrb[32].mxu1 %vm297_vm1, %v1872_v56  ;;  %6497 = vmatmul.mubr.msk.bf16.gmra.mrb[8].mxu0 %vm297_vm1, %v4673_v0  ;;  %v2516_v56 = vor.u32 %v2515_v51, %v2512_v50  ;;  %v7036_v0 = vld [vmem:[%s7200_s9 + $0x98] sm:$0xff]   ;;  %s6826_s9 = smul.u32 2304, %s7147_s16  ;;  %s7893_s16 = scalar_lea.sflag [#allocation4], %s161_s6 }
 0x135   : > { %6356 = vmatprep.mubr.msk.bf16.mxu1 %vm297_vm1, %v2454_v61  ;;  %6500 = vmatprep.mubr.msk.bf16.mxu0 %vm297_vm1, %v4675_v5  ;;  %v4690_v61 = vrot.slane %v7034_v59, 3  ;;  %v4694_v1 = vrot.slane %v7036_v0, 3 }
 0x136   : > { %v2517_v60 = vsel %vm2347_vm2, %v2507_v47, %v2516_v56  ;;  %s7885_s19 = scalar_lea.hbm %s7937_s3, %s6826_s9 }
 0x137   : > { %v4691_v3 = vsel %vm4660_vm7, %v4688_v40, %v4690_v61  ;;  %v4693_v2 = vsel %vm4660_vm7, %v4690_v61, %v4692_v38  ;;  %v4695_v5 = vsel %vm4660_vm7, %v4692_v38, %v4694_v1  ;;  %v4697_v8 = vsel %vm4660_vm7, %v4694_v1, %v4696_v6 }
 0x13c   : > { %6357 = vmatmul.mubr.msk.bf16.vlgmr.msra.gmra.mrb[20].mxu1 %vm297_vm1, %v2463_v11  ;;  %6501 = vmatmul.mubr.msk.bf16.gmra.mrb[12].mxu0 %vm297_vm1, %v4677_v19 }
 0x13d   : > { %6360 = vmatprep.mubr.msk.bf16.mxu1 %vm297_vm1, %v2472_v16  ;;  %6504 = vmatprep.mubr.msk.bf16.mxu0 %vm297_vm1, %v4679_v25 }
 0x144   : > { %6361 = vmatmul.mubr.msk.bf16.gmra.mrb[24].mxu1 %vm297_vm1, %v2481_v31  ;;  %6505 = vmatmul.mubr.msk.bf16.gmra.mrb[16].mxu0 %vm297_vm1, %v4681_v57 }
 0x145   : > { %6364 = vmatprep.mubr.msk.bf16.mxu1 %vm297_vm1, %v2490_v37  ;;  %6508 = vmatprep.mubr.msk.bf16.mxu0 %vm297_vm1, %v4683_v45 }
 0x14c   : > { %6365 = vmatmul.mubr.msk.bf16.gmra.mrb[28].mxu1 %vm297_vm1, %v2499_v49  ;;  %6509 = vmatmul.mubr.msk.bf16.gmra.mrb[20].mxu0 %vm297_vm1, %v4685_v54 }
 0x14d   : > { %6368 = vmatprep.mubr.msk.bf16.mxu1 %vm297_vm1, %v2508_v53  ;;  %6512 = vmatprep.mubr.msk.bf16.mxu0 %vm297_vm1, %v4687_v58 }
 0x154   : > { %6369 = vmatmul.mubr.msk.bf16.gmra.mrb[32].mxu1 %vm297_vm1, %v2517_v60  ;;  %6513 = vmatmul.mubr.msk.bf16.gmra.mrb[24].mxu0 %vm297_vm1, %v4689_v62 }
 0x155   : > { %6516 = vmatprep.mubr.msk.bf16.mxu0 %vm297_vm1, %v4691_v3 }
 0x15c   : > { %6517 = vmatmul.mubr.msk.bf16.gmra.mrb[28].mxu0 %vm297_vm1, %v4693_v2 }
 0x15d   : > { %6520 = vmatprep.mubr.msk.bf16.mxu0 %vm297_vm1, %v4695_v5 }
 0x164   : > { %6521 = vmatmul.mubr.msk.bf16.gmra.mrb[32].mxu0 %vm297_vm1, %v4697_v8 }
 0x1c7   : > { %v6300_v36 = vpop.f32.mrb[0].mxu1 }
 0x1c8   : > { %v1964_v9 = vpop.f32.mrb[1].mxu1 }
 0x1c9   : > { %v6301_v10 = vpop.f32.mrb[2].mxu1 }
 0x1ca   : > { %v1967_v11 = vpop.f32.mrb[3].mxu1 }
 0x1cf   : > { %v6304_v12 = vpop.f32.mrb[4].mxu1 }
 0x1d0   : > { %v1980_v13 = vpop.f32.mrb[5].mxu1 }
 0x1d1   : > { %v6305_v14 = vpop.f32.mrb[6].mxu1 }
 0x1d2   : > { %v1983_v15 = vpop.f32.mrb[7].mxu1 }
 0x1d7   : > { %v7734_v16 = vpop.f32.mrb[8].mxu1 }
 0x1d8   : > { %v7736_v22 = vpop.f32.mrb[9].mxu1 }
 0x1d9   : > { %v7738_v17 = vpop.f32.mrb[10].mxu1 }
 0x1da   : > { %v7740_v18 = vpop.f32.mrb[11].mxu1 }
 0x1df   : > { %v7742_v19 = vpop.f32.mrb[12].mxu1 }
 0x1e0   : > { %v7744_v20 = vpop.f32.mrb[13].mxu1 }
 0x1e1   : > { %v7746_v21 = vpop.f32.mrb[14].mxu1 }
 0x1e2   : > { %v7748_v23 = vpop.f32.mrb[15].mxu1 }
 0x1e7   : > { %v7750_v24 = vpop.f32.mrb[16].mxu1 }
 0x1e8   : > { %v7752_v25 = vpop.f32.mrb[17].mxu1 }
 0x1e9   : > { %v7754_v26 = vpop.f32.mrb[18].mxu1 }
 0x1ea   : > { %v7756_v27 = vpop.f32.mrb[19].mxu1 }
 0x1f7   : > { %v6490_v28 = vpop.f32.mrb[0].mxu0 }
 0x1f8   : > { %v6526_v30 = vadd.f32 %v6490_v28, %v6300_v36  ;;  %v4789_v31 = vpop.f32.mrb[1].mxu0 }
 0x1f9   : > { %v6527_v32 = vadd.f32 %v4789_v31, %v1964_v9  ;;  %v6491_v33 = vpop.f32.mrb[2].mxu0 }
 0x1fa   : > { %v5085_v34 = vadd.f32 %v6526_v30, %v7761_v29  ;;  %v6528_v35 = vadd.f32 %v6491_v33, %v6301_v10  ;;  %v4792_v37 = vpop.f32.mrb[3].mxu0 }
 0x1fb   : > { %v5083_v39 = vadd.f32 %v6527_v32, %v7761_v29  ;;  %v6529_v7 = vadd.f32 %v4792_v37, %v1967_v11 }
 0x1fc   : > { %v5157_v57 = vmul.f32 0.01, %v5085_v34  ;;  %v5086_v41 = vadd.f32 %v6528_v35, %v7761_v29  ;;  %vm5121_vm8 = vcmp.ge.f32.partialorder %v5085_v34, 0.0 }
 0x1fd   : > { %v5155_v42 = vmul.f32 0.01, %v5083_v39  ;;  %v5084_v43 = vadd.f32 %v6529_v7, %v7761_v29  ;;  %vm5119_vm9 = vcmp.ge.f32.partialorder %v5083_v39, 0.0 }
 0x1fe   : > { %vm5122_vm10 = vcmp.ge.f32.partialorder %v5086_v41, 0.0  ;;  %v5158_v44 = vmul.f32 0.01, %v5086_v41  ;;  %v5193_v47 = vsel %vm5121_vm8, %v5085_v34, %v5157_v57 }
 0x1ff   : > { %vm5120_vm11 = vcmp.ge.f32.partialorder %v5084_v43, 0.0  ;;  %v5156_v45 = vmul.f32 0.01, %v5084_v43  ;;  %v6494_v46 = vpop.f32.mrb[4].mxu0  ;;  %v5191_v51 = vsel %vm5119_vm9, %v5083_v39, %v5155_v42 }
 0x200   : > { %v5194_v48 = vsel %vm5122_vm10, %v5086_v41, %v5158_v44  ;;  %v6530_v49 = vadd.f32 %v6494_v46, %v6304_v12  ;;  %v4805_v50 = vpop.f32.mrb[5].mxu0 }
 0x201   : > { %v5912_v52 = vpack.c.bf16 %v5194_v48, %v5193_v47  ;;  %v5192_v53 = vsel %vm5120_vm11, %v5084_v43, %v5156_v45  ;;  %v6531_v54 = vadd.f32 %v4805_v50, %v1980_v13  ;;  %v6495_v55 = vpop.f32.mrb[6].mxu0 }
 0x202   : > { %v5907_v56 = vpack.c.bf16 %v5192_v53, %v5191_v51  ;;  %v5089_v58 = vadd.f32 %v6530_v49, %v7761_v29  ;;  %v6532_v59 = vadd.f32 %v6495_v55, %v6305_v14  ;;  %v4808_v40 = vpop.f32.mrb[7].mxu0 }
 0x203   : > { %5994 = vst [vmem:[%s7771_s8 + $0x8] sm:$0xff] %v5912_v52   ;;  %v5087_v60 = vadd.f32 %v6531_v54, %v7761_v29  ;;  %v6533_v61 = vadd.f32 %v4808_v40, %v1983_v15 }
 0x204   : > { %5908 = vst [vmem:[%s7771_s8] sm:$0xff] %v5907_v56   ;;  %v5161_v62 = vmul.f32 0.01, %v5089_v58  ;;  %v5090_v63 = vadd.f32 %v6532_v59, %v7761_v29  ;;  %vm5125_vm12 = vcmp.ge.f32.partialorder %v5089_v58, 0.0 }
 0x205   : > { %v5159_v3 = vmul.f32 0.01, %v5087_v60  ;;  %v5088_v0 = vadd.f32 %v6533_v61, %v7761_v29  ;;  %vm5123_vm13 = vcmp.ge.f32.partialorder %v5087_v60, 0.0 }
 0x206   : > { %vm5126_vm14 = vcmp.ge.f32.partialorder %v5090_v63, 0.0  ;;  %v5162_v38 = vmul.f32 0.01, %v5090_v63  ;;  %v5197_v4 = vsel %vm5125_vm12, %v5089_v58, %v5161_v62 }
 0x207   : > { %vm5124_vm15 = vcmp.ge.f32.partialorder %v5088_v0, 0.0  ;;  %v5160_v1 = vmul.f32 0.01, %v5088_v0  ;;  %v6498_v2 = vpop.f32.mrb[8].mxu0  ;;  %v5195_v36 = vsel %vm5123_vm13, %v5087_v60, %v5159_v3 }
 0x208   : > { %v5198_v5 = vsel %vm5126_vm14, %v5090_v63, %v5162_v38  ;;  %v6534_v6 = vadd.f32 %v6498_v2, %v7734_v16  ;;  %v4821_v8 = vpop.f32.mrb[9].mxu0 }
 0x209   : > { %v5922_v9 = vpack.c.bf16 %v5198_v5, %v5197_v4  ;;  %v5196_v10 = vsel %vm5124_vm15, %v5088_v0, %v5160_v1  ;;  %v6535_v11 = vadd.f32 %v4821_v8, %v7736_v22  ;;  %v6499_v12 = vpop.f32.mrb[10].mxu0 }
 0x20a   : > { %v5917_v13 = vpack.c.bf16 %v5196_v10, %v5195_v36  ;;  %v5093_v14 = vadd.f32 %v6534_v6, %v7761_v29  ;;  %v6536_v15 = vadd.f32 %v6499_v12, %v7738_v17  ;;  %v4824_v28 = vpop.f32.mrb[11].mxu0 }
 0x20b   : > { %5996 = vst [vmem:[%s7771_s8 + $0x18] sm:$0xff] %v5922_v9   ;;  %v5091_v30 = vadd.f32 %v6535_v11, %v7761_v29  ;;  %v6537_v31 = vadd.f32 %v4824_v28, %v7740_v18 }
 0x20c   : > { %5995 = vst [vmem:[%s7771_s8 + $0x10] sm:$0xff] %v5917_v13   ;;  %v5165_v16 = vmul.f32 0.01, %v5093_v14  ;;  %v5094_v33 = vadd.f32 %v6536_v15, %v7761_v29  ;;  %vm5129_vm0 = vcmp.ge.f32.partialorder %v5093_v14, 0.0 }
 0x20d   : > { %v5163_v22 = vmul.f32 0.01, %v5091_v30  ;;  %v5092_v35 = vadd.f32 %v6537_v31, %v7761_v29  ;;  %vm5127_vm1 = vcmp.ge.f32.partialorder %v5091_v30, 0.0 }
 0x20e   : > { %vm5130_vm2 = vcmp.ge.f32.partialorder %v5094_v33, 0.0  ;;  %v5166_v17 = vmul.f32 0.01, %v5094_v33  ;;  %v5201_v57 = vsel %vm5129_vm0, %v5093_v14, %v5165_v16 }
 0x20f   : > { %v7785_v32 = vpop.f32.mrb[20].mxu1  ;;  %vm5128_vm3 = vcmp.ge.f32.partialorder %v5092_v35, 0.0  ;;  %v5164_v18 = vmul.f32 0.01, %v5092_v35  ;;  %v6502_v7 = vpop.f32.mrb[12].mxu0  ;;  %v5199_v44 = vsel %vm5127_vm1, %v5091_v30, %v5163_v22 }
 0x210   : > { %v7789_v34 = vpop.f32.mrb[21].mxu1  ;;  %v5202_v41 = vsel %vm5130_vm2, %v5094_v33, %v5166_v17  ;;  %v6538_v42 = vadd.f32 %v6502_v7, %v7742_v19  ;;  %v4837_v43 = vpop.f32.mrb[13].mxu0 }
 0x211   : > { %v7792_v37 = vpop.f32.mrb[22].mxu1  ;;  %v5932_v45 = vpack.c.bf16 %v5202_v41, %v5201_v57  ;;  %v5200_v46 = vsel %vm5128_vm3, %v5092_v35, %v5164_v18  ;;  %v6539_v47 = vadd.f32 %v4837_v43, %v7744_v20  ;;  %v6503_v48 = vpop.f32.mrb[14].mxu0 }
 0x212   : > { %v7794_v39 = vpop.f32.mrb[23].mxu1  ;;  %v5927_v49 = vpack.c.bf16 %v5200_v46, %v5199_v44  ;;  %v5097_v50 = vadd.f32 %v6538_v42, %v7761_v29  ;;  %v6540_v51 = vadd.f32 %v6503_v48, %v7746_v21  ;;  %v4840_v52 = vpop.f32.mrb[15].mxu0 }
 0x213   : > { %5998 = vst [vmem:[%s7771_s8 + $0x28] sm:$0xff] %v5932_v45   ;;  %v5095_v53 = vadd.f32 %v6539_v47, %v7761_v29  ;;  %v6541_v54 = vadd.f32 %v4840_v52, %v7748_v23 }
 0x214   : > { %5997 = vst [vmem:[%s7771_s8 + $0x20] sm:$0xff] %v5927_v49   ;;  %v5169_v19 = vmul.f32 0.01, %v5097_v50  ;;  %v5098_v56 = vadd.f32 %v6540_v51, %v7761_v29  ;;  %vm5133_vm4 = vcmp.ge.f32.partialorder %v5097_v50, 0.0 }
 0x215   : > { %v5167_v20 = vmul.f32 0.01, %v5095_v53  ;;  %v5096_v59 = vadd.f32 %v6541_v54, %v7761_v29  ;;  %vm5131_vm5 = vcmp.ge.f32.partialorder %v5095_v53, 0.0 }
 0x216   : > { %vm5134_vm6 = vcmp.ge.f32.partialorder %v5098_v56, 0.0  ;;  %v5170_v21 = vmul.f32 0.01, %v5098_v56  ;;  %v5205_v62 = vsel %vm5133_vm4, %v5097_v50, %v5169_v19 }
 0x217   : > { %v7803_v55 = vpop.f32.mrb[24].mxu1  ;;  %vm5132_vm7 = vcmp.ge.f32.partialorder %v5096_v59, 0.0  ;;  %v5168_v23 = vmul.f32 0.01, %v5096_v59  ;;  %v6506_v61 = vpop.f32.mrb[16].mxu0  ;;  %v5203_v38 = vsel %vm5131_vm5, %v5095_v53, %v5167_v20 }
 0x218   : > { %v7807_v58 = vpop.f32.mrb[25].mxu1  ;;  %v5206_v63 = vsel %vm5134_vm6, %v5098_v56, %v5170_v21  ;;  %v6542_v3 = vadd.f32 %v6506_v61, %v7750_v24  ;;  %v4853_v0 = vpop.f32.mrb[17].mxu0 }
 0x219   : > { %v7810_v40 = vpop.f32.mrb[26].mxu1  ;;  %v5942_v1 = vpack.c.bf16 %v5206_v63, %v5205_v62  ;;  %v5204_v2 = vsel %vm5132_vm7, %v5096_v59, %v5168_v23  ;;  %v6543_v4 = vadd.f32 %v4853_v0, %v7752_v25  ;;  %v6507_v5 = vpop.f32.mrb[18].mxu0 }
 0x21a   : > { %v7812_v60 = vpop.f32.mrb[27].mxu1  ;;  %v5937_v6 = vpack.c.bf16 %v5204_v2, %v5203_v38  ;;  %v5101_v8 = vadd.f32 %v6542_v3, %v7761_v29  ;;  %v6544_v36 = vadd.f32 %v6507_v5, %v7754_v26  ;;  %v4856_v9 = vpop.f32.mrb[19].mxu0 }
 0x21b   : > { %6000 = vst [vmem:[%s7771_s8 + $0x38] sm:$0xff] %v5942_v1   ;;  %v5099_v10 = vadd.f32 %v6543_v4, %v7761_v29  ;;  %v6545_v11 = vadd.f32 %v4856_v9, %v7756_v27 }
 0x21c   : > { %5999 = vst [vmem:[%s7771_s8 + $0x30] sm:$0xff] %v5937_v6   ;;  %v5173_v24 = vmul.f32 0.01, %v5101_v8  ;;  %v5102_v13 = vadd.f32 %v6544_v36, %v7761_v29  ;;  %vm5137_vm8 = vcmp.ge.f32.partialorder %v5101_v8, 0.0 }
 0x21d   : > { %v5171_v25 = vmul.f32 0.01, %v5099_v10  ;;  %v5100_v15 = vadd.f32 %v6545_v11, %v7761_v29  ;;  %vm5135_vm9 = vcmp.ge.f32.partialorder %v5099_v10, 0.0 }
 0x21e   : > { %vm5138_vm10 = vcmp.ge.f32.partialorder %v5102_v13, 0.0  ;;  %v5174_v26 = vmul.f32 0.01, %v5102_v13  ;;  %v5209_v16 = vsel %vm5137_vm8, %v5101_v8, %v5173_v24 }
 0x21f   : > { %v7821_v12 = vpop.f32.mrb[28].mxu1  ;;  %vm5136_vm11 = vcmp.ge.f32.partialorder %v5100_v15, 0.0  ;;  %v5172_v27 = vmul.f32 0.01, %v5100_v15  ;;  %v6510_v31 = vpop.f32.mrb[20].mxu0  ;;  %v5207_v17 = vsel %vm5135_vm9, %v5099_v10, %v5171_v25 }
 0x220   : > { %v7825_v14 = vpop.f32.mrb[29].mxu1  ;;  %v5210_v33 = vsel %vm5138_vm10, %v5102_v13, %v5174_v26  ;;  %v6546_v22 = vadd.f32 %v6510_v31, %v7785_v32  ;;  %v4869_v35 = vpop.f32.mrb[21].mxu0 }
 0x221   : > { %v7828_v28 = vpop.f32.mrb[30].mxu1  ;;  %v5952_v18 = vpack.c.bf16 %v5210_v33, %v5209_v16  ;;  %v5208_v7 = vsel %vm5136_vm11, %v5100_v15, %v5172_v27  ;;  %v6547_v57 = vadd.f32 %v4869_v35, %v7789_v34  ;;  %v6511_v41 = vpop.f32.mrb[22].mxu0 }
 0x222   : > { %v7830_v30 = vpop.f32.mrb[31].mxu1  ;;  %v5947_v42 = vpack.c.bf16 %v5208_v7, %v5207_v17  ;;  %v5105_v43 = vadd.f32 %v6546_v22, %v7761_v29  ;;  %v6548_v44 = vadd.f32 %v6511_v41, %v7792_v37  ;;  %v4872_v45 = vpop.f32.mrb[23].mxu0 }
 0x223   : > { %6002 = vst [vmem:[%s7771_s8 + $0x48] sm:$0xff] %v5952_v18   ;;  %v5103_v46 = vadd.f32 %v6547_v57, %v7761_v29  ;;  %v6549_v47 = vadd.f32 %v4872_v45, %v7794_v39 }
 0x224   : > { %6001 = vst [vmem:[%s7771_s8 + $0x40] sm:$0xff] %v5947_v42   ;;  %v5177_v32 = vmul.f32 0.01, %v5105_v43  ;;  %v5106_v49 = vadd.f32 %v6548_v44, %v7761_v29  ;;  %vm5141_vm12 = vcmp.ge.f32.partialorder %v5105_v43, 0.0 }
 0x225   : > { %v5175_v34 = vmul.f32 0.01, %v5103_v46  ;;  %v5104_v51 = vadd.f32 %v6549_v47, %v7761_v29  ;;  %vm5139_vm13 = vcmp.ge.f32.partialorder %v5103_v46, 0.0 }
 0x226   : > { %vm5142_vm14 = vcmp.ge.f32.partialorder %v5106_v49, 0.0  ;;  %v5178_v37 = vmul.f32 0.01, %v5106_v49  ;;  %v5213_v19 = vsel %vm5141_vm12, %v5105_v43, %v5177_v32 }
 0x227   : > { %v7839_v48 = vpop.f32.mrb[32].mxu1  ;;  %vm5140_vm15 = vcmp.ge.f32.partialorder %v5104_v51, 0.0  ;;  %v5176_v39 = vmul.f32 0.01, %v5104_v51  ;;  %v6514_v54 = vpop.f32.mrb[24].mxu0  ;;  %v5211_v21 = vsel %vm5139_vm13, %v5103_v46, %v5175_v34 }
 0x228   : > { %v7843_v50 = vpop.f32.mrb[33].mxu1  ;;  %v5214_v56 = vsel %vm5142_vm14, %v5106_v49, %v5178_v37  ;;  %v6550_v20 = vadd.f32 %v6514_v54, %v7803_v55  ;;  %v4885_v59 = vpop.f32.mrb[25].mxu0 }
 0x229   : > { %v7846_v52 = vpop.f32.mrb[34].mxu1  ;;  %v5962_v23 = vpack.c.bf16 %v5214_v56, %v5213_v19  ;;  %v5212_v61 = vsel %vm5140_vm15, %v5104_v51, %v5176_v39  ;;  %v6551_v62 = vadd.f32 %v4885_v59, %v7807_v58  ;;  %v6515_v63 = vpop.f32.mrb[26].mxu0 }
 0x22a   : > { %v7848_v53 = vpop.f32.mrb[35].mxu1  ;;  %v5957_v3 = vpack.c.bf16 %v5212_v61, %v5211_v21  ;;  %v5109_v0 = vadd.f32 %v6550_v20, %v7761_v29  ;;  %v6552_v38 = vadd.f32 %v6515_v63, %v7810_v40  ;;  %v4888_v1 = vpop.f32.mrb[27].mxu0 }
 0x22b   : > { %6004 = vst [vmem:[%s7771_s8 + $0x58] sm:$0xff] %v5962_v23   ;;  %v5107_v2 = vadd.f32 %v6551_v62, %v7761_v29  ;;  %v6553_v4 = vadd.f32 %v4888_v1, %v7812_v60 }
 0x22c   : > { %6003 = vst [vmem:[%s7771_s8 + $0x50] sm:$0xff] %v5957_v3   ;;  %v5181_v55 = vmul.f32 0.01, %v5109_v0  ;;  %v5110_v5 = vadd.f32 %v6552_v38, %v7761_v29  ;;  %vm5145_vm0 = vcmp.ge.f32.partialorder %v5109_v0, 0.0 }
 0x22d   : > { %v5179_v6 = vmul.f32 0.01, %v5107_v2  ;;  %v5108_v58 = vadd.f32 %v6553_v4, %v7761_v29  ;;  %vm5143_vm1 = vcmp.ge.f32.partialorder %v5107_v2, 0.0 }
 0x22e   : > { %vm5146_vm2 = vcmp.ge.f32.partialorder %v5110_v5, 0.0  ;;  %v5182_v8 = vmul.f32 0.01, %v5110_v5  ;;  %v5217_v9 = vsel %vm5145_vm0, %v5109_v0, %v5181_v55 }
 0x22f   : > { %vm5144_vm3 = vcmp.ge.f32.partialorder %v5108_v58, 0.0  ;;  %v5180_v40 = vmul.f32 0.01, %v5108_v58  ;;  %v6518_v36 = vpop.f32.mrb[28].mxu0  ;;  %v5215_v24 = vsel %vm5143_vm1, %v5107_v2, %v5179_v6 }
 0x230   : > { %v5218_v10 = vsel %vm5146_vm2, %v5110_v5, %v5182_v8  ;;  %v6554_v60 = vadd.f32 %v6518_v36, %v7821_v12  ;;  %v4901_v11 = vpop.f32.mrb[29].mxu0 }
 0x231   : > { %v5972_v13 = vpack.c.bf16 %v5218_v10, %v5217_v9  ;;  %v5216_v25 = vsel %vm5144_vm3, %v5108_v58, %v5180_v40  ;;  %v6555_v15 = vadd.f32 %v4901_v11, %v7825_v14  ;;  %v6519_v26 = vpop.f32.mrb[30].mxu0 }
 0x232   : > { %v5967_v27 = vpack.c.bf16 %v5216_v25, %v5215_v24  ;;  %v5113_v31 = vadd.f32 %v6554_v60, %v7761_v29  ;;  %v6556_v16 = vadd.f32 %v6519_v26, %v7828_v28  ;;  %v4904_v33 = vpop.f32.mrb[31].mxu0 }
 0x233   : > { %6006 = vst [vmem:[%s7771_s8 + $0x68] sm:$0xff] %v5972_v13   ;;  %v5111_v22 = vadd.f32 %v6555_v15, %v7761_v29  ;;  %v6557_v35 = vadd.f32 %v4904_v33, %v7830_v30 }
 0x234   : > { %6005 = vst [vmem:[%s7771_s8 + $0x60] sm:$0xff] %v5967_v27   ;;  %v5185_v12 = vmul.f32 0.01, %v5113_v31  ;;  %v5114_v17 = vadd.f32 %v6556_v16, %v7761_v29  ;;  %vm5149_vm4 = vcmp.ge.f32.partialorder %v5113_v31, 0.0 }
 0x235   : > { %v5183_v18 = vmul.f32 0.01, %v5111_v22  ;;  %v5112_v14 = vadd.f32 %v6557_v35, %v7761_v29  ;;  %vm5147_vm5 = vcmp.ge.f32.partialorder %v5111_v22, 0.0 }
 0x236   : > { %vm5150_vm6 = vcmp.ge.f32.partialorder %v5114_v17, 0.0  ;;  %v5186_v7 = vmul.f32 0.01, %v5114_v17  ;;  %v5221_v41 = vsel %vm5149_vm4, %v5113_v31, %v5185_v12 }
 0x237   : > { %vm5148_vm7 = vcmp.ge.f32.partialorder %v5112_v14, 0.0  ;;  %v5184_v28 = vmul.f32 0.01, %v5112_v14  ;;  %v6522_v57 = vpop.f32.mrb[32].mxu0  ;;  %v5219_v44 = vsel %vm5147_vm5, %v5111_v22, %v5183_v18 }
 0x238   : > { %v5222_v42 = vsel %vm5150_vm6, %v5114_v17, %v5186_v7  ;;  %v6558_v30 = vadd.f32 %v6522_v57, %v7839_v48  ;;  %v4917_v43 = vpop.f32.mrb[33].mxu0 }
 0x239   : > { %v5982_v45 = vpack.c.bf16 %v5222_v42, %v5221_v41  ;;  %v5220_v46 = vsel %vm5148_vm7, %v5112_v14, %v5184_v28  ;;  %v6559_v47 = vadd.f32 %v4917_v43, %v7843_v50  ;;  %v6523_v32 = vpop.f32.mrb[34].mxu0 }
 0x23a   : > { %v5977_v49 = vpack.c.bf16 %v5220_v46, %v5219_v44  ;;  %v5117_v34 = vadd.f32 %v6558_v30, %v7761_v29  ;;  %v6560_v51 = vadd.f32 %v6523_v32, %v7846_v52  ;;  %v4920_v37 = vpop.f32.mrb[35].mxu0 }
 0x23b   : > { %6008 = vst [vmem:[%s7771_s8 + $0x78] sm:$0xff] %v5982_v45   ;;  %v5115_v39 = vadd.f32 %v6559_v47, %v7761_v29  ;;  %v6561_v48 = vadd.f32 %v4920_v37, %v7848_v53 }
 0x23c   : > { %6007 = vst [vmem:[%s7771_s8 + $0x70] sm:$0xff] %v5977_v49   ;;  %v5189_v54 = vmul.f32 0.01, %v5117_v34  ;;  %v5118_v19 = vadd.f32 %v6560_v51, %v7761_v29  ;;  %vm5153_vm8 = vcmp.ge.f32.partialorder %v5117_v34, 0.0 }
 0x23d   : > { %v5187_v56 = vmul.f32 0.01, %v5115_v39  ;;  %v5116_v50 = vadd.f32 %v6561_v48, %v7761_v29  ;;  %vm5151_vm9 = vcmp.ge.f32.partialorder %v5115_v39, 0.0 }
 0x23e   : > { %vm5154_vm10 = vcmp.ge.f32.partialorder %v5118_v19, 0.0  ;;  %v5190_v52 = vmul.f32 0.01, %v5118_v19  ;;  %v5225_v53 = vsel %vm5153_vm8, %v5117_v34, %v5189_v54 }
 0x23f   : > { %vm5152_vm11 = vcmp.ge.f32.partialorder %v5116_v50, 0.0  ;;  %v5188_v20 = vmul.f32 0.01, %v5116_v50  ;;  %v5223_v21 = vsel %vm5151_vm9, %v5115_v39, %v5187_v56 }
 0x240   : > { %v5226_v59 = vsel %vm5154_vm10, %v5118_v19, %v5190_v52 }
 0x241   : > { %v5992_v23 = vpack.c.bf16 %v5226_v59, %v5225_v53  ;;  %v5224_v61 = vsel %vm5152_vm11, %v5116_v50, %v5188_v20 }
 0x242   : > { %v5987_v29 = vpack.c.bf16 %v5224_v61, %v5223_v21 }
 0x243   : > { %6010 = vst [vmem:[%s7771_s8 + $0x88] sm:$0xff] %v5992_v23  }
 0x244   : > { %6009 = vst [vmem:[%s7771_s8 + $0x80] sm:$0xff] %v5987_v29  }
 0x245   : > { %7052 = shalt.err (!%p7049_p3)
}
 0x246   : > { %s7053_s27 = scalar_lea.hbm %s7885_s19, 2304  ;;  %s7057_s30 = scalar_lea.hbm %s7937_s3, 4608 }
 0x247   : > { %p7054_p4 = scmp.ne.s32.totalorder %s7885_s19, %s7053_s27  ;;  %p7058_p9 = scmp.lt.u32.totalorder %s7885_s19, %s7937_s3 }
 0x248   : > { %p7059_p10 = scmp.lt.u32.totalorder %s7057_s30, %s7053_s27  ;;  %p7061_p12 = scmp.lt.u32.totalorder %s7053_s27, %s7885_s19 }
 0x249   : > { %p7055_p7 = pnand %p7054_p4, %p7164_p5 }
 0x24a   : > { %p7060_p11 = por %p7059_p10, %p7058_p9 }
 0x24b   : > { %p7056_p8 = pneg %p7055_p7 }
 0x24c   : > { %p7062_p13 = por %p7061_p12, %p7060_p11 }
 0x24e   : > { %p7063_p0 = pnand %p7062_p13, %p7056_p8 }
 0x250   : > { %7066 = shalt.err (!%p7063_p0)
}
 0x251   : > { %s7104_s6 = smov 64   ;;  %s7105_s7 = smov 4  }
 0x252   : > { %6827 = dma.vmem_to_hbm [thread:$0]  (%p7164_p5), %s7887_s10, 2304, %s7885_s19, %s7893_s16, %s7104_s6, %s7104_s6, %s7105_s7  }
 0x253 PF: > { %p6833_p1 = scmp.ge.s32.totalorder %s7101_s15, 2  ;;  %s5436_s8 = sand.u32 1, %s7089_s12  }
 0x254   : > { %s5437_s9 = scalar_lea.sflag [#allocation4], %s5436_s8 }
 0x255   : > { %p6830_p2 = pnand %p6833_p1, %p7168_p6 }
 0x257   : > { %7084 = dma.done.wait (!%p6830_p2), %s5437_s9, 2304  }
 0x258   : > { %7086 = vsyncadd (!%p6830_p2), %s5437_s9, 4294964992  ;;  %p13_p3 = scmp.ge.s32.totalorder %s7151_s18, 4   ;;  %s7940_s12 = smov %s7093_s13 }
 0x259   : > { %s7941_s13 = smov %s7097_s14  ;;  %s7942_s14 = smov %s7162_s21 }
 0x25a   : > { %s7943_s15 = smov %s7151_s18  ;;  %15 = sbr.rel (!%p13_p3) target bundleno = 3 (0x3), region = 75 }
 0x261   :  { %5442 = vsyncpa [#allocation4], 1 }
 0x262   :  { %5444 = vsyncpa [#allocation4 + $0x1], 1 }

</bundles_post_ra>
